<compile_context>
chip_gen: v6e
topology: v6e:2x2x1
jax: 0.10.0
libtpu: 0.0.40
codegen_flags: <defaults>
</compile_context>

<pallas_src>
import functools

import jax
import jax.numpy as jnp
from jax import lax
from jax.experimental import pallas as pl
from jax.experimental.pallas import tpu as pltpu


def _round_up(x, m):
    return (x + m - 1) // m * m


def _vmem_capacity_bytes():
    try:
        return int(pltpu.get_tpu_info().vmem_capacity_bytes)
    except Exception:  # pragma: no cover - conservative (v7x-sized) fallback
        return 64 * 1024 * 1024


def _pick_tiles(n_valid, bpad, jpad, slab_itemsize, vmem_cap_bytes):
    """Pick anchor (ti) / negative (tk) tile sizes, generation-aware."""
    if vmem_cap_bytes >= 100 * 1024 * 1024:   # v5e / v6e: 128 MiB physical VMEM
        vmem_limit, slab_budget = 96 * 1024 * 1024, 8 * 1024 * 1024
    else:                                     # v7x: 64 MiB physical VMEM
        vmem_limit, slab_budget = 48 * 1024 * 1024, 3 * 1024 * 1024

    tk = 128                                  # lane axis of the slab
    ti_cap = min(256, _round_up(n_valid, 8))
    # ~3 slab-sized temporaries coexist -> budget 3x one (ti, jpad, tk) slab.
    fit = max(8, min(ti_cap, slab_budget // (3 * jpad * tk * slab_itemsize) // 8 * 8))
    # Among tiles that fit, minimise padded (dead) anchor rows, then prefer the
    # largest tile (fewer grid steps).
    ti, rows_pad = min(((c, _round_up(n_valid, c)) for c in range(8, fit + 1, 8)),
                       key=lambda cr: (cr[1], -cr[0]))
    # If the anchor tile maxed out, spend leftover budget on a wider k tile.
    while (ti == ti_cap and tk * 2 <= min(bpad, 512) and bpad % (tk * 2) == 0
           and 3 * ti * jpad * (tk * 2) * slab_itemsize <= slab_budget):
        tk *= 2
    return ti, tk, rows_pad, rows_pad // ti, bpad // tk, vmem_limit


def _triplet_loss_kernel(emb_tile_ref, emb_t_ref, sq_row_ref, lab_col_ref,
                         lab_row_ref, sum_ref, cnt_ref, d_pos_sc, d_neg_sc,
                         *, margin, n_valid, jpad, slab_dtype):
    ii = pl.program_id(0)          # anchor tile
    kk = pl.program_id(1)          # negative (k) tile
    ti, bpad = d_pos_sc.shape
    tk = sum_ref.shape[1]

    @pl.when(kk == 0)
    def _build_masked_distances():
        # Pairwise distances for this anchor tile: MXU Gram tile + VPU norms.
        # (Default MXU precision; reference uses HIGHEST -> borderline hinge
        #  activations can differ by <1e-5, acceptable for a loss.)
        e_tile = emb_tile_ref[...]                              # (ti, Dp)
        e_t = emb_t_ref[...]                                    # (Dp, Bp)
        g = lax.dot_general(e_tile, e_t,
                            dimension_numbers=(((1,), (0,)), ((), ())),
                            preferred_element_type=jnp.float32)  # (ti, Bp)
        sq_i = jnp.sum(e_tile * e_tile, axis=1, keepdims=True)   # (ti, 1)
        sq_j = sq_row_ref[...]                                    # (1, Bp)
        d2 = jnp.maximum(sq_i - 2.0 * g + sq_j, 0.0)
        d = jnp.where(d2 == 0.0, 0.0, jnp.sqrt(d2))               # squared=False

        # 2D validity masks (j!=k, i!=k are implied by the label constraints).
        lab_i = lab_col_ref[...]                                  # (ti, 1)
        lab_j = lab_row_ref[...]                                  # (1, Bp)
        leq = lab_i == lab_j
        row0 = ii * ti
        i_idx = row0 + lax.broadcasted_iota(jnp.int32, (ti, bpad), 0)
        j_idx = lax.broadcasted_iota(jnp.int32, (ti, bpad), 1)
        in_j = j_idx < n_valid
        pos_ok = leq & (i_idx != j_idx) & (i_idx < n_valid) & in_j
        neg_ok = jnp.logical_not(leq) & in_j

        # Fold masks (+margin) into the 2D rows with finite sentinels
        # (not +-inf: inf - inf = NaN would poison max/sum).
        d_pos_sc[...] = jnp.where(pos_ok, d + margin, -1e9).astype(d_pos_sc.dtype)
        d_neg_sc[...] = jnp.where(neg_ok, d, 1e9).astype(d_neg_sc.dtype)

    # Steady state: (ti, jpad, tk) hinge slab, reduced over the positive axis
    # only; the scalar collapse + divide is deferred to the wrapper.
    k0 = pl.multiple_of(kk * tk, 128)
    d_neg = d_neg_sc[:, pl.ds(k0, tk)].astype(slab_dtype)        # (ti, tk)
    d_pos = d_pos_sc[:, :jpad].astype(slab_dtype)                # (ti, jpad)
    slab = jnp.maximum(d_pos[:, :, None] - d_neg[:, None, :], 0.0)
    sum_ref[...] = jnp.sum(slab, axis=1, dtype=jnp.float32)                    # (ti, tk)
    cnt_ref[...] = jnp.sum((slab > 0).astype(jnp.float32), axis=1)             # (ti, tk)


def triplet_loss_batch_all(embeddings, labels, margin=1.0, slab_dtype=jnp.float32):
    """Pallas wrapper. embeddings: (B, D) float, labels: (B,) int. Returns scalar loss."""
    B, D = embeddings.shape
    emb = embeddings.astype(jnp.float32)
    labels = labels.astype(jnp.int32)

    bpad = max(128, _round_up(B, 128))          # lane axis (negatives / Gram columns)
    dpad = max(128, _round_up(D, 128))          # contracting dim
    jpad = min(bpad, _round_up(B, 8))           # slab positive axis lives on sublanes

    itemsize = jnp.dtype(slab_dtype).itemsize
    ti, tk, rows_pad, num_i, num_k, vmem_limit = _pick_tiles(
        B, bpad, jpad, itemsize, _vmem_capacity_bytes())

    # Anchor-side arrays are padded only to the anchor-tile granularity so fully
    # padded anchor tiles are never iterated.
    emb_rows = jnp.zeros((rows_pad, dpad), jnp.float32).at[:B, :D].set(emb)
    emb_t = jnp.zeros((dpad, bpad), jnp.float32).at[:D, :B].set(emb.T)
    sq_row = jnp.zeros((1, bpad), jnp.float32).at[0, :B].set(jnp.sum(emb * emb, axis=1))
    lab_col = jnp.full((rows_pad, 1), -1, jnp.int32).at[:B, 0].set(labels)
    lab_row = jnp.full((1, bpad), -1, jnp.int32).at[0, :B].set(labels)

    def _run(single_buffer_resident, jpad_eff):
        kernel = functools.partial(_triplet_loss_kernel, margin=float(margin),
                                   n_valid=B, jpad=jpad_eff, slab_dtype=slab_dtype)
        if single_buffer_resident:
            emb_t_spec = pl.BlockSpec((dpad, bpad), lambda i, k: (0, 0),
                                      pipeline_mode=pl.Buffered(1))
        else:
            emb_t_spec = pl.BlockSpec((dpad, bpad), lambda i, k: (0, 0))
        call = pl.pallas_call(
            kernel,
            out_shape=(jax.ShapeDtypeStruct((rows_pad, bpad), jnp.float32),
                       jax.ShapeDtypeStruct((rows_pad, bpad), jnp.float32)),
            grid_spec=pltpu.PrefetchScalarGridSpec(
                num_scalar_prefetch=0,
                grid=(num_i, num_k),
                in_specs=[
                    pl.BlockSpec((ti, dpad), lambda i, k: (i, 0)),   # anchor rows
                    emb_t_spec,                                      # all embeddings^T (resident)
                    pl.BlockSpec((1, bpad), lambda i, k: (0, 0)),    # squared norms (resident)
                    pl.BlockSpec((ti, 1), lambda i, k: (i, 0)),      # anchor labels (column)
                    pl.BlockSpec((1, bpad), lambda i, k: (0, 0)),    # all labels (row, resident)
                ],
                out_specs=[
                    pl.BlockSpec((ti, tk), lambda i, k: (i, k)),     # partial hinge sums
                    pl.BlockSpec((ti, tk), lambda i, k: (i, k)),     # partial positive counts
                ],
                scratch_shapes=[
                    pltpu.VMEM((ti, bpad), slab_dtype),   # masked d(anchor, positive)+margin
                    pltpu.VMEM((ti, bpad), slab_dtype),   # masked d(anchor, negative)
                ],
            ),
            compiler_params=pltpu.CompilerParams(
                dimension_semantics=("parallel", "arbitrary"),
                vmem_limit_bytes=vmem_limit,
            ),
        )
        return call(emb_rows, emb_t, sq_row, lab_col, lab_row)

    try:
        sums, cnts = _run(True, jpad)
    except Exception:  # pragma: no cover - conservative fallback configuration
        sums, cnts = _run(False, bpad)

    # Padded anchor rows / columns contribute exactly zero, so the wrapper-side
    # reduce over the lane-dense partials is correct.  (f32 count is exact up to
    # ~2^24 active triplets.)
    return jnp.sum(sums) / (jnp.sum(cnts) + 1e-16)


def _reference_triplet_loss(embeddings, labels, margin=1.0):
    """Pure-JAX reference mirroring the PyTorch module."""
    g = jnp.dot(embeddings, embeddings.T, precision=lax.Precision.HIGHEST)
    sq = jnp.diagonal(g)
    d2 = jnp.maximum(sq[:, None] - 2.0 * g + sq[None, :], 0.0)
    zmask = (d2 == 0.0).astype(jnp.float32)
    dist = jnp.sqrt(d2 + zmask * 1e-16) * (1.0 - zmask)

    tl = dist[:, :, None] - dist[:, None, :] + margin
    B = labels.shape[0]
    ne = ~jnp.eye(B, dtype=bool)
    distinct = ne[:, :, None] & ne[:, None, :] & ne[None, :, :]
    leq = labels[:, None] == labels[None, :]
    valid = leq[:, :, None] & (~leq[:, None, :])
    mask = (distinct & valid).astype(jnp.float32)
    tl = jnp.maximum(tl * mask, 0.0)
    num_pos = jnp.sum((tl > 0.0).astype(jnp.float32))
    return jnp.sum(tl) / (num_pos + 1e-16)


if __name__ == "__main__":
    key = jax.random.PRNGKey(0)
    B, D = 8, 32
    embeddings = jax.random.normal(key, (B, D), dtype=jnp.float32)
    labels = jnp.array([0, 0, 1, 1, 2, 2, 3, 3], dtype=jnp.int32)

    loss = triplet_loss_batch_all(embeddings, labels, margin=1.0)
    loss = jax.block_until_ready(loss)

    ref = _reference_triplet_loss(embeddings, labels, margin=1.0)
    assert jnp.allclose(loss, ref, rtol=1e-4, atol=1e-5), (loss, ref)

    print("KERNEL_OK")
</pallas_src>

<mosaic_0001>
module attributes {stable_mosaic.version = 11 : i64} {
  func.func @_triplet_loss_kernel(%arg0: i32, %arg1: i32, %arg2: memref<8x128xf32, #tpu.memory_space<vmem>>, %arg3: memref<128x128xf32, #tpu.memory_space<vmem>>, %arg4: memref<1x128xf32, #tpu.memory_space<vmem>>, %arg5: memref<8x1xi32, #tpu.memory_space<vmem>>, %arg6: memref<1x128xi32, #tpu.memory_space<vmem>>, %arg7: memref<8x128xf32, #tpu.memory_space<vmem>>, %arg8: memref<8x128xf32, #tpu.memory_space<vmem>>, %arg9: memref<8x128xf32, #tpu.memory_space<vmem>>, %arg10: memref<8x128xf32, #tpu.memory_space<vmem>>) attributes {dimension_semantics = [#tpu.dimension_semantics<parallel>, #tpu.dimension_semantics<arbitrary>], iteration_bounds = array<i64: 1, 1>, scalar_prefetch = 0 : i64, scratch_operands = 2 : i64, tpu.core_type = #tpu.core_type<tc>, window_params = [{transform_indices = @transform_0, window_bounds = array<i64: 8, 128>}, {pipeline_mode = #tpu.pipeline_mode<synchronous>, transform_indices = @transform_1, window_bounds = array<i64: 128, 128>}, {pipeline_mode = #tpu.pipeline_mode<synchronous>, transform_indices = @transform_2, window_bounds = array<i64: 1, 128>}, {transform_indices = @transform_3, window_bounds = array<i64: 8, 1>}, {pipeline_mode = #tpu.pipeline_mode<synchronous>, transform_indices = @transform_4, window_bounds = array<i64: 1, 128>}, {transform_indices = @transform_5, window_bounds = array<i64: 8, 128>}, {transform_indices = @transform_6, window_bounds = array<i64: 8, 128>}]} {
    %c0_i32 = arith.constant 0 : i32
    %0 = arith.cmpi eq, %arg1, %c0_i32 : i32
    %1 = arith.extui %0 : i1 to i32
    %c0_i32_0 = arith.constant 0 : i32
    %2 = arith.cmpi ne, %1, %c0_i32_0 : i32
    scf.if %2 {
      %c0_10 = arith.constant 0 : index
      %c0_11 = arith.constant 0 : index
      %23 = vector.load %arg2[%c0_10, %c0_11] : memref<8x128xf32, #tpu.memory_space<vmem>>, vector<8x128xf32>
      %c0_12 = arith.constant 0 : index
      %c0_13 = arith.constant 0 : index
      %24 = vector.load %arg3[%c0_12, %c0_13] : memref<128x128xf32, #tpu.memory_space<vmem>>, vector<128x128xf32>
      %cst_14 = arith.constant dense<0.000000e+00> : vector<8x128xf32>
      %25 = tpu.matmul %23, %24, %cst_14 {dimension_numbers = #tpu.dot_dimension_numbers<[1], [0], [0], [1], [0, 0, 1, 1], [], []>} : vector<8x128xf32>, vector<128x128xf32>, vector<8x128xf32> -> vector<8x128xf32>
      %26 = arith.mulf %23, %23 : vector<8x128xf32>
      %cst_15 = arith.constant dense<0.000000e+00> : vector<8xf32>
      %27 = vector.multi_reduction <add>, %26, %cst_15 [1] : vector<8x128xf32> to vector<8xf32>
      %28 = vector.shape_cast %27 : vector<8xf32> to vector<8x1xf32>
      %c0_16 = arith.constant 0 : index
      %c0_17 = arith.constant 0 : index
      %29 = vector.load %arg4[%c0_16, %c0_17] : memref<1x128xf32, #tpu.memory_space<vmem>>, vector<1x128xf32>
      %cst_18 = arith.constant 2.000000e+00 : f32
      %30 = vector.broadcast %cst_18 : f32 to vector<8x128xf32>
      %31 = arith.mulf %30, %25 : vector<8x128xf32>
      %32 = vector.broadcast %28 : vector<8x1xf32> to vector<8x128xf32>
      %33 = arith.subf %32, %31 : vector<8x128xf32>
      %34 = vector.broadcast %29 : vector<1x128xf32> to vector<8x128xf32>
      %35 = arith.addf %33, %34 : vector<8x128xf32>
      %cst_19 = arith.constant 0.000000e+00 : f32
      %36 = vector.broadcast %cst_19 : f32 to vector<8x128xf32>
      %37 = arith.maximumf %35, %36 : vector<8x128xf32>
      %cst_20 = arith.constant 0.000000e+00 : f32
      %38 = vector.broadcast %cst_20 : f32 to vector<8x128xf32>
      %39 = arith.cmpf oeq, %37, %38 : vector<8x128xf32>
      %40 = math.sqrt %37 : vector<8x128xf32>
      %cst_21 = arith.constant 0.000000e+00 : f32
      %41 = vector.broadcast %cst_21 : f32 to vector<8x128xf32>
      %42 = arith.select %39, %41, %40 : vector<8x128xi1>, vector<8x128xf32>
      %c0_22 = arith.constant 0 : index
      %c0_23 = arith.constant 0 : index
      %43 = vector.load %arg5[%c0_22, %c0_23] : memref<8x1xi32, #tpu.memory_space<vmem>>, vector<8x1xi32>
      %c0_24 = arith.constant 0 : index
      %c0_25 = arith.constant 0 : index
      %44 = vector.load %arg6[%c0_24, %c0_25] : memref<1x128xi32, #tpu.memory_space<vmem>>, vector<1x128xi32>
      %45 = vector.broadcast %43 : vector<8x1xi32> to vector<8x128xi32>
      %46 = vector.broadcast %44 : vector<1x128xi32> to vector<8x128xi32>
      %47 = arith.cmpi eq, %45, %46 : vector<8x128xi32>
      %c8_i32 = arith.constant 8 : i32
      %48 = arith.muli %arg0, %c8_i32 : i32
      %49 = tpu.iota {dimensions = array<i32: 0>} : vector<8x128xi32>
      %50 = vector.broadcast %48 : i32 to vector<8x128xi32>
      %51 = arith.addi %50, %49 : vector<8x128xi32>
      %52 = tpu.iota {dimensions = array<i32: 1>} : vector<8x128xi32>
      %c8_i32_26 = arith.constant 8 : i32
      %53 = vector.broadcast %c8_i32_26 : i32 to vector<8x128xi32>
      %54 = arith.cmpi slt, %52, %53 : vector<8x128xi32>
      %55 = arith.cmpi ne, %51, %52 : vector<8x128xi32>
      %56 = arith.andi %47, %55 : vector<8x128xi1>
      %c8_i32_27 = arith.constant 8 : i32
      %57 = vector.broadcast %c8_i32_27 : i32 to vector<8x128xi32>
      %58 = arith.cmpi slt, %51, %57 : vector<8x128xi32>
      %59 = arith.andi %56, %58 : vector<8x128xi1>
      %60 = arith.andi %59, %54 : vector<8x128xi1>
      %cst_28 = arith.constant dense<true> : vector<8x128xi1>
      %61 = arith.xori %47, %cst_28 : vector<8x128xi1>
      %62 = arith.andi %61, %54 : vector<8x128xi1>
      %cst_29 = arith.constant 1.000000e+00 : f32
      %63 = vector.broadcast %cst_29 : f32 to vector<8x128xf32>
      %64 = arith.addf %42, %63 : vector<8x128xf32>
      %cst_30 = arith.constant -1.000000e+09 : f32
      %65 = vector.broadcast %cst_30 : f32 to vector<8x128xf32>
      %66 = arith.select %60, %64, %65 : vector<8x128xi1>, vector<8x128xf32>
      %c0_31 = arith.constant 0 : index
      %c0_32 = arith.constant 0 : index
      %67 = vector.load %arg9[%c0_31, %c0_32] : memref<8x128xf32, #tpu.memory_space<vmem>>, vector<8x128xf32>
      tpu.vector_store %arg9[%c0_31, %c0_32], %66 {strides = array<i32>} : memref<8x128xf32, #tpu.memory_space<vmem>>, vector<8x128xf32>,
      %cst_33 = arith.constant 1.000000e+09 : f32
      %68 = vector.broadcast %cst_33 : f32 to vector<8x128xf32>
      %69 = arith.select %62, %42, %68 : vector<8x128xi1>, vector<8x128xf32>
      %c0_34 = arith.constant 0 : index
      %c0_35 = arith.constant 0 : index
      %70 = vector.load %arg10[%c0_34, %c0_35] : memref<8x128xf32, #tpu.memory_space<vmem>>, vector<8x128xf32>
      tpu.vector_store %arg10[%c0_34, %c0_35], %69 {strides = array<i32>} : memref<8x128xf32, #tpu.memory_space<vmem>>, vector<8x128xf32>,
    } else {
    }
    %c128_i32 = arith.constant 128 : i32
    %3 = arith.muli %arg1, %c128_i32 : i32
    %4 = tpu.assume_multiple %3, 128 : i32
    %c0 = arith.constant 0 : index
    %5 = arith.index_cast %4 : i32 to index
    %6 = vector.load %arg10[%c0, %5] : memref<8x128xf32, #tpu.memory_space<vmem>>, vector<8x128xf32>
    %c0_1 = arith.constant 0 : index
    %c0_2 = arith.constant 0 : index
    %7 = vector.load %arg9[%c0_1, %c0_2] : memref<8x128xf32, #tpu.memory_space<vmem>>, vector<8x8xf32>
    %8 = vector.shape_cast %7 : vector<8x8xf32> to vector<8x8x1xf32>
    %9 = vector.shape_cast %6 : vector<8x128xf32> to vector<8x1x128xf32>
    %10 = vector.broadcast %8 : vector<8x8x1xf32> to vector<8x8x128xf32>
    %11 = vector.broadcast %9 : vector<8x1x128xf32> to vector<8x8x128xf32>
    %12 = arith.subf %10, %11 : vector<8x8x128xf32>
    %cst = arith.constant 0.000000e+00 : f32
    %13 = vector.broadcast %cst : f32 to vector<8x8x128xf32>
    %14 = arith.maximumf %12, %13 : vector<8x8x128xf32>
    %cst_3 = arith.constant dense<0.000000e+00> : vector<8x128xf32>
    %15 = vector.multi_reduction <add>, %14, %cst_3 [1] : vector<8x8x128xf32> to vector<8x128xf32>
    %c0_4 = arith.constant 0 : index
    %c0_5 = arith.constant 0 : index
    %16 = vector.load %arg7[%c0_4, %c0_5] : memref<8x128xf32, #tpu.memory_space<vmem>>, vector<8x128xf32>
    tpu.vector_store %arg7[%c0_4, %c0_5], %15 {strides = array<i32>} : memref<8x128xf32, #tpu.memory_space<vmem>>, vector<8x128xf32>,
    %cst_6 = arith.constant 0.000000e+00 : f32
    %17 = vector.broadcast %cst_6 : f32 to vector<8x8x128xf32>
    %18 = arith.cmpf ogt, %14, %17 : vector<8x8x128xf32>
    %19 = arith.extui %18 : vector<8x8x128xi1> to vector<8x8x128xi32>
    %20 = arith.sitofp %19 : vector<8x8x128xi32> to vector<8x8x128xf32>
    %cst_7 = arith.constant dense<0.000000e+00> : vector<8x128xf32>
    %21 = vector.multi_reduction <add>, %20, %cst_7 [1] : vector<8x8x128xf32> to vector<8x128xf32>
    %c0_8 = arith.constant 0 : index
    %c0_9 = arith.constant 0 : index
    %22 = vector.load %arg8[%c0_8, %c0_9] : memref<8x128xf32, #tpu.memory_space<vmem>>, vector<8x128xf32>
    tpu.vector_store %arg8[%c0_8, %c0_9], %21 {strides = array<i32>} : memref<8x128xf32, #tpu.memory_space<vmem>>, vector<8x128xf32>,
    return
  }
  func.func @transform_0(%arg0: i32, %arg1: i32) -> (i32, i32) {
    %c0_i32 = arith.constant 0 : i32
    %c0_i32_0 = arith.constant 0 : i32
    return %arg0, %c0_i32 : i32, i32
  }
  func.func @transform_1(%arg0: i32, %arg1: i32) -> (i32, i32) {
    %c0_i32 = arith.constant 0 : i32
    %c0_i32_0 = arith.constant 0 : i32
    %c0_i32_1 = arith.constant 0 : i32
    return %c0_i32, %c0_i32_0 : i32, i32
  }
  func.func @transform_2(%arg0: i32, %arg1: i32) -> (i32, i32) {
    %c0_i32 = arith.constant 0 : i32
    %c0_i32_0 = arith.constant 0 : i32
    %c0_i32_1 = arith.constant 0 : i32
    return %c0_i32, %c0_i32_0 : i32, i32
  }
  func.func @transform_3(%arg0: i32, %arg1: i32) -> (i32, i32) {
    %c0_i32 = arith.constant 0 : i32
    %c0_i32_0 = arith.constant 0 : i32
    return %arg0, %c0_i32 : i32, i32
  }
  func.func @transform_4(%arg0: i32, %arg1: i32) -> (i32, i32) {
    %c0_i32 = arith.constant 0 : i32
    %c0_i32_0 = arith.constant 0 : i32
    %c0_i32_1 = arith.constant 0 : i32
    return %c0_i32, %c0_i32_0 : i32, i32
  }
  func.func @transform_5(%arg0: i32, %arg1: i32) -> (i32, i32) {
    %c0_i32 = arith.constant 0 : i32
    return %arg0, %arg1 : i32, i32
  }
  func.func @transform_6(%arg0: i32, %arg1: i32) -> (i32, i32) {
    %c0_i32 = arith.constant 0 : i32
    return %arg0, %arg1 : i32, i32
  }
}

module attributes {stable_mosaic.version = 11 : i64} {
  func.func @_triplet_loss_kernel(%arg0: i32, %arg1: i32, %arg2: memref<8x128xf32, #tpu.memory_space<vmem>>, %arg3: memref<128x128xf32, #tpu.memory_space<vmem>>, %arg4: memref<1x128xf32, #tpu.memory_space<vmem>>, %arg5: memref<8x1xi32, #tpu.memory_space<vmem>>, %arg6: memref<1x128xi32, #tpu.memory_space<vmem>>, %arg7: memref<8x128xf32, #tpu.memory_space<vmem>>, %arg8: memref<8x128xf32, #tpu.memory_space<vmem>>, %arg9: memref<8x128xf32, #tpu.memory_space<vmem>>, %arg10: memref<8x128xf32, #tpu.memory_space<vmem>>) attributes {dimension_semantics = [#tpu.dimension_semantics<parallel>, #tpu.dimension_semantics<arbitrary>], iteration_bounds = array<i64: 1, 1>, scalar_prefetch = 0 : i64, scratch_operands = 2 : i64, tpu.core_type = #tpu.core_type<tc>, window_params = [{transform_indices = @transform_0, window_bounds = array<i64: 8, 128>}, {pipeline_mode = #tpu.pipeline_mode<synchronous>, transform_indices = @transform_1, window_bounds = array<i64: 128, 128>}, {pipeline_mode = #tpu.pipeline_mode<synchronous>, transform_indices = @transform_2, window_bounds = array<i64: 1, 128>}, {transform_indices = @transform_3, window_bounds = array<i64: 8, 1>}, {pipeline_mode = #tpu.pipeline_mode<synchronous>, transform_indices = @transform_4, window_bounds = array<i64: 1, 128>}, {transform_indices = @transform_5, window_bounds = array<i64: 8, 128>}, {transform_indices = @transform_6, window_bounds = array<i64: 8, 128>}]} {
    %c0_i32 = arith.constant 0 : i32
    %0 = arith.cmpi eq, %arg1, %c0_i32 : i32
    %1 = arith.extui %0 : i1 to i32
    %c0_i32_0 = arith.constant 0 : i32
    %2 = arith.cmpi ne, %1, %c0_i32_0 : i32
    scf.if %2 {
      %c0_10 = arith.constant 0 : index
      %c0_11 = arith.constant 0 : index
      %23 = vector.load %arg2[%c0_10, %c0_11] : memref<8x128xf32, #tpu.memory_space<vmem>>, vector<8x128xf32>
      %c0_12 = arith.constant 0 : index
      %c0_13 = arith.constant 0 : index
      %24 = vector.load %arg3[%c0_12, %c0_13] : memref<128x128xf32, #tpu.memory_space<vmem>>, vector<128x128xf32>
      %cst_14 = arith.constant dense<0.000000e+00> : vector<8x128xf32>
      %25 = tpu.matmul %23, %24, %cst_14 {dimension_numbers = #tpu.dot_dimension_numbers<[1], [0], [0], [1], [0, 0, 1, 1], [], []>} : vector<8x128xf32>, vector<128x128xf32>, vector<8x128xf32> -> vector<8x128xf32>
      %26 = arith.mulf %23, %23 : vector<8x128xf32>
      %cst_15 = arith.constant dense<0.000000e+00> : vector<8xf32>
      %27 = vector.multi_reduction <add>, %26, %cst_15 [1] : vector<8x128xf32> to vector<8xf32>
      %28 = vector.shape_cast %27 : vector<8xf32> to vector<8x1xf32>
      %c0_16 = arith.constant 0 : index
      %c0_17 = arith.constant 0 : index
      %29 = vector.load %arg4[%c0_16, %c0_17] : memref<1x128xf32, #tpu.memory_space<vmem>>, vector<1x128xf32>
      %cst_18 = arith.constant 2.000000e+00 : f32
      %30 = vector.broadcast %cst_18 : f32 to vector<8x128xf32>
      %31 = arith.mulf %30, %25 : vector<8x128xf32>
      %32 = vector.broadcast %28 : vector<8x1xf32> to vector<8x128xf32>
      %33 = arith.subf %32, %31 : vector<8x128xf32>
      %34 = vector.broadcast %29 : vector<1x128xf32> to vector<8x128xf32>
      %35 = arith.addf %33, %34 : vector<8x128xf32>
      %cst_19 = arith.constant 0.000000e+00 : f32
      %36 = vector.broadcast %cst_19 : f32 to vector<8x128xf32>
      %37 = arith.maximumf %35, %36 : vector<8x128xf32>
      %cst_20 = arith.constant 0.000000e+00 : f32
      %38 = vector.broadcast %cst_20 : f32 to vector<8x128xf32>
      %39 = arith.cmpf oeq, %37, %38 : vector<8x128xf32>
      %40 = math.sqrt %37 : vector<8x128xf32>
      %cst_21 = arith.constant 0.000000e+00 : f32
      %41 = vector.broadcast %cst_21 : f32 to vector<8x128xf32>
      %42 = arith.select %39, %41, %40 : vector<8x128xi1>, vector<8x128xf32>
      %c0_22 = arith.constant 0 : index
      %c0_23 = arith.constant 0 : index
      %43 = vector.load %arg5[%c0_22, %c0_23] : memref<8x1xi32, #tpu.memory_space<vmem>>, vector<8x1xi32>
      %c0_24 = arith.constant 0 : index
      %c0_25 = arith.constant 0 : index
      %44 = vector.load %arg6[%c0_24, %c0_25] : memref<1x128xi32, #tpu.memory_space<vmem>>, vector<1x128xi32>
      %45 = vector.broadcast %43 : vector<8x1xi32> to vector<8x128xi32>
      %46 = vector.broadcast %44 : vector<1x128xi32> to vector<8x128xi32>
      %47 = arith.cmpi eq, %45, %46 : vector<8x128xi32>
      %c8_i32 = arith.constant 8 : i32
      %48 = arith.muli %arg0, %c8_i32 : i32
      %49 = tpu.iota {dimensions = array<i32: 0>} : vector<8x128xi32>
      %50 = vector.broadcast %48 : i32 to vector<8x128xi32>
      %51 = arith.addi %50, %49 : vector<8x128xi32>
      %52 = tpu.iota {dimensions = array<i32: 1>} : vector<8x128xi32>
      %c8_i32_26 = arith.constant 8 : i32
      %53 = vector.broadcast %c8_i32_26 : i32 to vector<8x128xi32>
      %54 = arith.cmpi slt, %52, %53 : vector<8x128xi32>
      %55 = arith.cmpi ne, %51, %52 : vector<8x128xi32>
      %56 = arith.andi %47, %55 : vector<8x128xi1>
      %c8_i32_27 = arith.constant 8 : i32
      %57 = vector.broadcast %c8_i32_27 : i32 to vector<8x128xi32>
      %58 = arith.cmpi slt, %51, %57 : vector<8x128xi32>
      %59 = arith.andi %56, %58 : vector<8x128xi1>
      %60 = arith.andi %59, %54 : vector<8x128xi1>
      %cst_28 = arith.constant dense<true> : vector<8x128xi1>
      %61 = arith.xori %47, %cst_28 : vector<8x128xi1>
      %62 = arith.andi %61, %54 : vector<8x128xi1>
      %cst_29 = arith.constant 1.000000e+00 : f32
      %63 = vector.broadcast %cst_29 : f32 to vector<8x128xf32>
      %64 = arith.addf %42, %63 : vector<8x128xf32>
      %cst_30 = arith.constant -1.000000e+09 : f32
      %65 = vector.broadcast %cst_30 : f32 to vector<8x128xf32>
      %66 = arith.select %60, %64, %65 : vector<8x128xi1>, vector<8x128xf32>
      %c0_31 = arith.constant 0 : index
      %c0_32 = arith.constant 0 : index
      %67 = vector.load %arg9[%c0_31, %c0_32] : memref<8x128xf32, #tpu.memory_space<vmem>>, vector<8x128xf32>
      tpu.vector_store %arg9[%c0_31, %c0_32], %66 {strides = array<i32>} : memref<8x128xf32, #tpu.memory_space<vmem>>, vector<8x128xf32>,
      %cst_33 = arith.constant 1.000000e+09 : f32
      %68 = vector.broadcast %cst_33 : f32 to vector<8x128xf32>
      %69 = arith.select %62, %42, %68 : vector<8x128xi1>, vector<8x128xf32>
      %c0_34 = arith.constant 0 : index
      %c0_35 = arith.constant 0 : index
      %70 = vector.load %arg10[%c0_34, %c0_35] : memref<8x128xf32, #tpu.memory_space<vmem>>, vector<8x128xf32>
      tpu.vector_store %arg10[%c0_34, %c0_35], %69 {strides = array<i32>} : memref<8x128xf32, #tpu.memory_space<vmem>>, vector<8x128xf32>,
    } else {
    }
    %c128_i32 = arith.constant 128 : i32
    %3 = arith.muli %arg1, %c128_i32 : i32
    %4 = tpu.assume_multiple %3, 128 : i32
    %c0 = arith.constant 0 : index
    %5 = arith.index_cast %4 : i32 to index
    %6 = vector.load %arg10[%c0, %5] : memref<8x128xf32, #tpu.memory_space<vmem>>, vector<8x128xf32>
    %c0_1 = arith.constant 0 : index
    %c0_2 = arith.constant 0 : index
    %7 = vector.load %arg9[%c0_1, %c0_2] : memref<8x128xf32, #tpu.memory_space<vmem>>, vector<8x128xf32>
    %8 = vector.shape_cast %7 : vector<8x128xf32> to vector<8x128x1xf32>
    %9 = vector.shape_cast %6 : vector<8x128xf32> to vector<8x1x128xf32>
    %10 = vector.broadcast %8 : vector<8x128x1xf32> to vector<8x128x128xf32>
    %11 = vector.broadcast %9 : vector<8x1x128xf32> to vector<8x128x128xf32>
    %12 = arith.subf %10, %11 : vector<8x128x128xf32>
    %cst = arith.constant 0.000000e+00 : f32
    %13 = vector.broadcast %cst : f32 to vector<8x128x128xf32>
    %14 = arith.maximumf %12, %13 : vector<8x128x128xf32>
    %cst_3 = arith.constant dense<0.000000e+00> : vector<8x128xf32>
    %15 = vector.multi_reduction <add>, %14, %cst_3 [1] : vector<8x128x128xf32> to vector<8x128xf32>
    %c0_4 = arith.constant 0 : index
    %c0_5 = arith.constant 0 : index
    %16 = vector.load %arg7[%c0_4, %c0_5] : memref<8x128xf32, #tpu.memory_space<vmem>>, vector<8x128xf32>
    tpu.vector_store %arg7[%c0_4, %c0_5], %15 {strides = array<i32>} : memref<8x128xf32, #tpu.memory_space<vmem>>, vector<8x128xf32>,
    %cst_6 = arith.constant 0.000000e+00 : f32
    %17 = vector.broadcast %cst_6 : f32 to vector<8x128x128xf32>
    %18 = arith.cmpf ogt, %14, %17 : vector<8x128x128xf32>
    %19 = arith.extui %18 : vector<8x128x128xi1> to vector<8x128x128xi32>
    %20 = arith.sitofp %19 : vector<8x128x128xi32> to vector<8x128x128xf32>
    %cst_7 = arith.constant dense<0.000000e+00> : vector<8x128xf32>
    %21 = vector.multi_reduction <add>, %20, %cst_7 [1] : vector<8x128x128xf32> to vector<8x128xf32>
    %c0_8 = arith.constant 0 : index
    %c0_9 = arith.constant 0 : index
    %22 = vector.load %arg8[%c0_8, %c0_9] : memref<8x128xf32, #tpu.memory_space<vmem>>, vector<8x128xf32>
    tpu.vector_store %arg8[%c0_8, %c0_9], %21 {strides = array<i32>} : memref<8x128xf32, #tpu.memory_space<vmem>>, vector<8x128xf32>,
    return
  }
  func.func @transform_0(%arg0: i32, %arg1: i32) -> (i32, i32) {
    %c0_i32 = arith.constant 0 : i32
    %c0_i32_0 = arith.constant 0 : i32
    return %arg0, %c0_i32 : i32, i32
  }
  func.func @transform_1(%arg0: i32, %arg1: i32) -> (i32, i32) {
    %c0_i32 = arith.constant 0 : i32
    %c0_i32_0 = arith.constant 0 : i32
    %c0_i32_1 = arith.constant 0 : i32
    return %c0_i32, %c0_i32_0 : i32, i32
  }
  func.func @transform_2(%arg0: i32, %arg1: i32) -> (i32, i32) {
    %c0_i32 = arith.constant 0 : i32
    %c0_i32_0 = arith.constant 0 : i32
    %c0_i32_1 = arith.constant 0 : i32
    return %c0_i32, %c0_i32_0 : i32, i32
  }
  func.func @transform_3(%arg0: i32, %arg1: i32) -> (i32, i32) {
    %c0_i32 = arith.constant 0 : i32
    %c0_i32_0 = arith.constant 0 : i32
    return %arg0, %c0_i32 : i32, i32
  }
  func.func @transform_4(%arg0: i32, %arg1: i32) -> (i32, i32) {
    %c0_i32 = arith.constant 0 : i32
    %c0_i32_0 = arith.constant 0 : i32
    %c0_i32_1 = arith.constant 0 : i32
    return %c0_i32, %c0_i32_0 : i32, i32
  }
  func.func @transform_5(%arg0: i32, %arg1: i32) -> (i32, i32) {
    %c0_i32 = arith.constant 0 : i32
    return %arg0, %arg1 : i32, i32
  }
  func.func @transform_6(%arg0: i32, %arg1: i32) -> (i32, i32) {
    %c0_i32 = arith.constant 0 : i32
    return %arg0, %arg1 : i32, i32
  }
}

</mosaic_0001>

<bundles_post_ra>
// kernel: tpu_custom_call.1
= control target key start
LH: loop header
LB: loop body
LE: loop exit
PB: predicated region body
PF: predicated region fallthrough
CT: control target
= control target key end

     0   :  { %12 = vsyncpa [#allocation5], 0  ;;  %s845_s0 = inlined_call_operand.vmem [shape: f32[8,128], index: 0, kind: input, shape index: {}]   ;;  %s846_s1 = inlined_call_operand.hbm [shape: f32[128,128], index: 1, kind: input, shape index: {}]   ;;  %s847_s2 = inlined_call_operand.vmem [shape: f32[1,128], index: 2, kind: input, shape index: {}]   ;;  %s848_s3 = inlined_call_operand.vmem [shape: s32[8,1], index: 3, kind: input, shape index: {}]   ;;  %s849_s4 = inlined_call_operand.vmem [shape: s32[1,128], index: 4, kind: input, shape index: {}]   ;;  %s850_s5 = inlined_call_operand.hbm [shape: f32[8,128], index: 5, kind: output, shape index: {0}]   ;;  %s851_s6 = inlined_call_operand.hbm [shape: f32[8,128], index: 6, kind: output, shape index: {1}]  }
   0x1   :  { %13 = vsyncpa [#allocation6], 0 }
   0x2   :  { %14 = vsyncpa [#allocation9], 0  ;;  %s682_s21 = smov [#allocation4]  }
   0x3   :  { %s22_s22 = sshll.u32 %s682_s21, 4  ;;  %s23_s22 = int_to_ptr.vmem [resolvable:$true] %s22_s22 }
   0x4   :  { %s624_s23 = scalar_lea.vmem %s23_s22, 2048  ;;  %p629_p1 = scmp.lt.s32.totalorder %s23_s22, %s23_s22 }
   0x5   :  { %p625_p0 = scmp.ne.s32.totalorder %s23_s22, %s624_s23  ;;  %p630_p2 = scmp.lt.s32.totalorder %s624_s23, %s624_s23 }
   0x7   :  { %p631_p3 = por %p630_p2, %p629_p1 }
   0x9   :  { %p632_p4 = pnand %p631_p3, %p625_p0 }
   0xb   :  { %635 = shalt.err (!%p632_p4)
}
   0xc   :  { %s683_s24 = smov 128   ;;  %s684_s25 = smov 8  }
   0xd   :  { %28 = dma.hbm_to_vmem [thread:$0]  %s846_s1, 2048, %s23_s22, [#allocation5], %s683_s24, %s683_s24, %s684_s25  }
   0xe   :  { %676 = dma.done.wait [#allocation5], 2048  }
   0xf   :  { %677 = vsyncadd [#allocation5], 4294965248  ;;  %v685_v0 = vmov 0.0   ;;  %vm686_vm0 = vmmov 0   ;;  %v687_v1 = vmov 0   ;;  %v58_v2 = vld [vmem:[#allocation4 + $0x78] sm:$0xff]  ;;  %v163_v21 = vlaneseq }
  0x10   :  { %568 = vmatprep.subr.mxu0 %v685_v0  ;;  %600 = vmatprep.mubr.msk.f32.mxu0 %vm686_vm0, %v685_v0  ;;  %v57_v3 = vld [vmem:[#allocation4 + $0x70] sm:$0xff]  ;;  %v56_v4 = vld [vmem:[#allocation4 + $0x68] sm:$0xff]  ;;  %v55_v5 = vld [vmem:[#allocation4 + $0x60] sm:$0xff]  ;;  %vm688_vm3 = vmmov 1   ;;  %v689_v35 = vmov 1966171168  }
  0x11   :  { %613 = vset.pattern.permute.xlu0 %v687_v1  ;;  %569 = vmatpush3.msra.mxu0 %v58_v2  ;;  %v42_v6 = vld [vmem:[%s845_s0] sm:$0xff]  ;;  %v54_v7 = vld [vmem:[#allocation4 + $0x58] sm:$0xff]  ;;  %v53_v9 = vld [vmem:[#allocation4 + $0x50] sm:$0xff]  ;;  %v168_v24 = vand.u32 127, %v163_v21  ;;  %v765_v34 = vshrl.u32 %v163_v21, 7  ;;  %v247_v36 = vunpack.c.l.s4 %v689_v35  ;;  %vm406_vm14 = vcmask 1041409  }
  0x12   :  { %570 = vmatprep.subr.mxu0 %v685_v0  ;;  %v129_v8 = vmul.f32 %v42_v6, %v42_v6  ;;  %v52_v10 = vld [vmem:[#allocation4 + $0x48] sm:$0xff]  ;;  %v51_v11 = vld [vmem:[#allocation4 + $0x40] sm:$0xff]  ;;  %v50_v12 = vld [vmem:[#allocation4 + $0x38] sm:$0xff]  ;;  %vm408_vm0 = vcmask 1042434   ;;  %s691_s9 = smov [#allocation8]  }
  0x13   :  { %571 = vmatpush3.msra.mxu0 %v57_v3  ;;  %v49_v13 = vld [vmem:[#allocation4 + $0x30] sm:$0xff]  ;;  %v48_v14 = vld [vmem:[#allocation4 + $0x28] sm:$0xff]  ;;  %v47_v15 = vld [vmem:[#allocation4 + $0x20] sm:$0xff]  ;;  %vm169_vm2 = vcmp.lt.s32.totalorder %v168_v24, 8  ;;  %vm170_vm6 = vcmp.ne.s32.totalorder %v765_v34, %v168_v24  ;;  %v248_v37 = vunpack.c.0.s8 %v247_v36  ;;  %v772_v45 = vsub.s32 0, %v765_v34  ;;  %s527_s10 = sshll.u32 %s691_s9, 4  ;;  %s528_s10 = int_to_ptr.vmem [resolvable:$true] %s527_s10 }
  0x14   :  { %572 = vmatprep.subr.mxu0 %v685_v0  ;;  %130 = vadd.xlane.f32.xlu0 %v129_v8  ;;  %v46_v16 = vld [vmem:[#allocation4 + $0x18] sm:$0xff]  ;;  %v45_v17 = vld [vmem:[#allocation4 + $0x10] sm:$0xff]  ;;  %v44_v18 = vld [vmem:[#allocation4 + $0x8] sm:$0xff]  ;;  %v197_v51 = vsub.s32 1, %v765_v34  ;;  %v204_v57 = vsub.s32 2, %v765_v34 }
  0x15   :  { %573 = vmatpush3.msra.mxu0 %v56_v4  ;;  %v152_v19 = vld [vmem:[%s848_s3] sm:$0xff]  ;;  %v251_v41 = vsub.s32 %v248_v37, %v765_v34 }
  0x16   :  { %574 = vmatprep.subr.mxu0 %v685_v0  ;;  %v43_v20 = vld [vmem:[#allocation4] sm:$0xff] }
  0x17   :  { %575 = vmatpush3.msra.mxu0 %v55_v5  ;;  %v542_v23 = vld [vmem:[%s849_s4] ss:$0 sm:$0xff] }
  0x18   :  { %576 = vmatprep.subr.mxu0 %v685_v0  ;;  %v541_v29 = vld [vmem:[%s847_s2] ss:$0 sm:$0xff]  ;;  %s690_s2 = smov [#allocation7]  }
  0x19   :  { %577 = vmatpush3.msra.mxu0 %v54_v7  ;;  %v211_v7 = vsub.s32 3, %v765_v34  ;;  %s517_s4 = sshll.u32 %s690_s2, 4  ;;  %s518_s4 = int_to_ptr.vmem [resolvable:$true] %s517_s4 }
  0x1a   :  { %578 = vmatprep.subr.mxu0 %v685_v0  ;;  %s636_s11 = scalar_lea.vmem %s518_s4, 128  ;;  %p641_p6 = scmp.lt.s32.totalorder %s518_s4, %s518_s4 }
  0x1b   :  { %579 = vmatpush3.msra.mxu0 %v53_v9  ;;  %p637_p5 = scmp.ne.s32.totalorder %s518_s4, %s636_s11  ;;  %p642_p7 = scmp.lt.s32.totalorder %s636_s11, %s636_s11 }
  0x1c   :  { %580 = vmatprep.subr.mxu0 %v685_v0 }
  0x1d   :  { %581 = vmatpush3.msra.mxu0 %v52_v10  ;;  %p643_p8 = por %p642_p7, %p641_p6 }
  0x1e   :  { %582 = vmatprep.subr.mxu0 %v685_v0 }
  0x1f   :  { %583 = vmatpush3.msra.mxu0 %v51_v11  ;;  %p644_p9 = pnand %p643_p8, %p637_p5 }
  0x20   :  { %584 = vmatprep.subr.mxu0 %v685_v0 }
  0x21   :  { %585 = vmatpush3.msra.mxu0 %v50_v12 }
  0x22   :  { %586 = vmatprep.subr.mxu0 %v685_v0 }
  0x23   :  { %587 = vmatpush3.msra.mxu0 %v49_v13 }
  0x24   :  { %588 = vmatprep.subr.mxu0 %v685_v0 }
  0x25   :  { %589 = vmatpush3.msra.mxu0 %v48_v14  ;;  %v218_v14 = vsub.s32 4, %v765_v34 }
  0x26   :  { %590 = vmatprep.subr.mxu0 %v685_v0 }
  0x27   :  { %591 = vmatpush3.msra.mxu0 %v47_v15 }
  0x28   :  { %592 = vmatprep.subr.mxu0 %v685_v0 }
  0x29   :  { %593 = vmatpush3.msra.mxu0 %v46_v16  ;;  %v225_v16 = vsub.s32 5, %v765_v34 }
  0x2a   :  { %594 = vmatprep.subr.mxu0 %v685_v0  ;;  %155 = vperm.xlu0 %613, %v152_v19  }
  0x2b   :  { %595 = vmatpush3.msra.mxu0 %v45_v17 }
  0x2c   :  { %596 = vmatprep.subr.mxu0 %v685_v0 }
  0x2d   :  { %597 = vmatpush3.msra.mxu0 %v44_v18  ;;  %v232_v18 = vsub.s32 6, %v765_v34 }
  0x2e   :  { %598 = vmatprep.subr.mxu0 %v685_v0 }
  0x2f   :  { %599 = vmatpush3.msra.mxu0 %v43_v20  ;;  %v239_v20 = vsub.s32 7, %v765_v34 }
  0x30   :  { %601 = vmatmul.mubr.f32.vlgmr.msra.gmra.mxu0 %v42_v6 }
  0x9d   :  { %v131_v22 = vpop.xlane.xlu0 %130 }
  0xa5   :  { %v156_v25 = vpop.permute.xlu0 %155 }
  0xa6   :  { %vm161_vm1 = vcmp.eq.s32.totalorder %v156_v25, %v542_v23 }
  0xa7   :  { %vm175_vm4 = vmxor %vm161_vm1, %vm688_vm3 }
  0xa8   :  { %vm758_vm5 = vmand %vm175_vm4, %vm169_vm2  ;;  %vm412_vm4 = vcmask 1044484  }
  0xa9   :  { %vm171_vm8 = vmand %vm161_vm1, %vm170_vm6 }
  0xaa   :  { %vm174_vm10 = vmand %vm171_vm8, %vm169_vm2  ;;  %vm410_vm2 = vcmask 1043459   ;;  %vm416_vm8 = vcmask 1046534  }
  0xf0   :  { %v125_v27 = vpop.f32.mrf.mxu0 }
  0xf1   :  { %v133_v28 = vmul.f32 2.0, %v125_v27 }
  0xf2   :  { %v602_v30 = vpop.f32.mrf.mxu0 }
  0xf3   :  { %v134_v31 = vsub.f32 %v131_v22, %v133_v28 }
  0xf5   :  { %v141_v32 = vadd.f32 %v541_v29, %v134_v31 }
  0xf7   :  { %v142_v33 = vmax.f32 %v141_v32, 0.0 }
  0xf9   :  { %614 = vrsqrt.f32 %v142_v33  ;;  %vm146_vm7 = vcmp.eq.f32.partialorder %v142_v33, inf  ;;  %v149_v40 = vand.u32 2147483648, %v142_v33  ;;  %vm143_vm9 = vcmp.eq.f32.partialorder %v142_v33, 0.0 }
 0x106   :  { %v615_v38 = vpop.eup %614 }
 0x107   :  { %v145_v39 = vmul.f32 %v615_v38, %v142_v33 }
 0x109   :  { %v147_v42 = vsel %vm146_vm7, %v142_v33, %v145_v39 }
 0x10a   :  { %v150_v43 = vsel %vm143_vm9, %v149_v40, %v147_v42 }
 0x10b   :  { %v151_v44 = vsel %vm143_vm9, 0.0, %v150_v43  ;;  %vm418_vm9 = vcmask 1047559  }
 0x10c   :  { %v177_v46 = vadd.f32 1.0, %v151_v44  ;;  %v180_v47 = vsel %vm758_vm5, %v151_v44, 1e+09  ;;  %vm414_vm5 = vcmask 1045509  }
 0x10d   :  { %v245_v48 = vcombine.high %v180_v47, %v180_v47  ;;  %v252_v49 = vrot.slane %v180_v47, %v251_v41 }
 0x10e   :  { %v178_v50 = vsel %vm174_vm10, %v177_v46, -1e+09 }
 0x10f   :  { %v191_v52 = vrot.slane %v178_v50, %v772_v45  ;;  %v268_v53 = vrot.slane %v252_v49, %v251_v41  ;;  %v260_v54 = vcombine.high %v252_v49, %v252_v49  ;;  %v259_v55 = vrot.slane %v245_v48, %v251_v41 }
 0x110   :  { %v198_v56 = vrot.slane %v178_v50, %v197_v51  ;;  %v205_v6 = vrot.slane %v178_v50, %v204_v57  ;;  %v212_v13 = vrot.slane %v178_v50, %v211_v7  ;;  %v219_v15 = vrot.slane %v178_v50, %v218_v14 }
 0x111   :  { %193 = vbcast.lane.b32.xlu1 %v191_v52, 256  ;;  %v297_v58 = vrot.slane %v268_v53, %v772_v45  ;;  %v282_v59 = vrot.slane %v260_v54, %v251_v41  ;;  %v290_v60 = vcombine.high %v268_v53, %v268_v53  ;;  %v780_v61 = vrot.slane %v259_v55, %v251_v41 }
 0x112   :  { %v261_v62 = vcombine.high %v259_v55, %v259_v55  ;;  %v226_v17 = vrot.slane %v178_v50, %v225_v16  ;;  %v233_v19 = vrot.slane %v178_v50, %v232_v18  ;;  %v240_v21 = vrot.slane %v178_v50, %v239_v20 }
 0x113   :  { %v301_v63 = vrot.slane %v282_v59, %v772_v45  ;;  %v305_v1 = vrot.slane %v290_v60, %v772_v45  ;;  %v292_v2 = vcombine.high %v282_v59, %v282_v59  ;;  %v313_v3 = vrot.slane %v780_v61, %v772_v45 }
 0x114   :  { %v786_v4 = vrot.slane %v261_v62, %v251_v41  ;;  %v291_v5 = vcombine.high %v780_v61, %v780_v61 }
 0x115   :  { %200 = vbcast.lane.b32.xlu1 %v198_v56, 256  ;;  %v309_v8 = vrot.slane %v292_v2, %v772_v45 }
 0x116   :  { %v317_v9 = vrot.slane %v786_v4, %v772_v45  ;;  %v795_v10 = vrot.slane %v291_v5, %v772_v45  ;;  %v293_v11 = vcombine.high %v786_v4, %v786_v4 }
 0x118   :  { %v800_v12 = vrot.slane %v293_v11, %v772_v45 }
 0x119   :  { %207 = vbcast.lane.b32.xlu1 %v205_v6, 256 }
 0x11d   :  { %214 = vbcast.lane.b32.xlu1 %v212_v13, 256 }
 0x121   :  { %221 = vbcast.lane.b32.xlu1 %v219_v15, 256 }
 0x125   :  { %228 = vbcast.lane.b32.xlu1 %v226_v17, 256 }
 0x129   :  { %235 = vbcast.lane.b32.xlu1 %v233_v19, 256 }
 0x12d   :  { %242 = vbcast.lane.b32.xlu1 %v240_v21, 256 }
 0x183   :  { %v194_v22 = vpop.permute.xlu1 %193 }
 0x184   :  { %v334_v23 = vsub.f32 %v194_v22, %v297_v58 }
 0x186   :  { %v342_v24 = vmax.f32 %v334_v23, 0.0 }
 0x187   :  { %v201_v25 = vpop.permute.xlu1 %200 }
 0x188   :  { %v350_v26 = vrot.slane %v342_v24, 4  ;;  %vm422_vm11 = vcmp.gt.f32.partialorder %v342_v24, 0.0  ;;  %v335_v27 = vsub.f32 %v201_v25, %v301_v63 }
 0x189   :  { %v543_v28 = vsel %vm422_vm11, 1.0, %v685_v0 }
 0x18a   :  { %v351_v29 = vadd.f32 %v350_v26, %v342_v24  ;;  %v446_v30 = vrot.slane %v543_v28, 4  ;;  %v343_v31 = vmax.f32 %v335_v27, 0.0 }
 0x18b   :  { %v208_v32 = vpop.permute.xlu1 %207 }
 0x18c   :  { %v352_v33 = vrot.slane %v351_v29, 2  ;;  %v447_v35 = vadd.f32 %v543_v28, %v446_v30  ;;  %v356_v36 = vrot.slane %v343_v31, 4  ;;  %vm423_vm12 = vcmp.gt.f32.partialorder %v343_v31, 0.0 }
 0x18d   :  { %v544_v34 = vsel %vm423_vm12, 1.0, %v685_v0  ;;  %v336_v37 = vsub.f32 %v208_v32, %v305_v1 }
 0x18e   :  { %v353_v38 = vadd.f32 %v352_v33, %v351_v29  ;;  %v448_v39 = vrot.slane %v447_v35, 2  ;;  %v357_v40 = vadd.f32 %v356_v36, %v343_v31  ;;  %v452_v41 = vrot.slane %v544_v34, 4 }
 0x18f   :  { %v344_v42 = vmax.f32 %v336_v37, 0.0  ;;  %v215_v43 = vpop.permute.xlu1 %214 }
 0x190   :  { %v354_v44 = vrot.slane %v353_v38, 1  ;;  %v449_v46 = vadd.f32 %v448_v39, %v447_v35  ;;  %v358_v47 = vrot.slane %v357_v40, 2  ;;  %v453_v48 = vadd.f32 %v544_v34, %v452_v41 }
 0x191   :  { %v362_v49 = vrot.slane %v344_v42, 4  ;;  %vm424_vm13 = vcmp.gt.f32.partialorder %v344_v42, 0.0  ;;  %v337_v50 = vsub.f32 %v215_v43, %v309_v8 }
 0x192   :  { %v450_v51 = vrot.slane %v449_v46, 1  ;;  %v359_v52 = vadd.f32 %v358_v47, %v357_v40  ;;  %v454_v53 = vrot.slane %v453_v48, 2  ;;  %v355_v54 = vadd.f32 %v354_v44, %v353_v38 }
 0x193   :  { %v363_v55 = vadd.f32 %v362_v49, %v344_v42  ;;  %v545_v56 = vsel %vm424_vm13, 1.0, %v685_v0  ;;  %v345_v57 = vmax.f32 %v337_v50, 0.0  ;;  %v222_v58 = vpop.permute.xlu1 %221 }
 0x194   :  { %v451_v59 = vadd.f32 %v450_v51, %v449_v46  ;;  %v360_v60 = vrot.slane %v359_v52, 1  ;;  %v455_v62 = vadd.f32 %v454_v53, %v453_v48  ;;  %v458_v63 = vrot.slane %v545_v56, 4 }
 0x195   :  { %v364_v1 = vrot.slane %v363_v55, 2  ;;  %v368_v2 = vrot.slane %v345_v57, 4  ;;  %vm425_vm15 = vcmp.gt.f32.partialorder %v345_v57, 0.0  ;;  %v338_v5 = vsub.f32 %v222_v58, %v313_v3 }
 0x196   :  { %v361_v6 = vadd.f32 %v360_v60, %v359_v52  ;;  %v456_v7 = vrot.slane %v455_v62, 1  ;;  %v459_v8 = vadd.f32 %v545_v56, %v458_v63  ;;  %v546_v11 = vsel %vm425_vm15, 1.0, %v685_v0 }
 0x197   :  { %v365_v13 = vadd.f32 %v364_v1, %v363_v55  ;;  %v369_v14 = vadd.f32 %v368_v2, %v345_v57  ;;  %v464_v15 = vrot.slane %v546_v11, 4  ;;  %v346_v16 = vmax.f32 %v338_v5, 0.0  ;;  %v229_v17 = vpop.permute.xlu1 %228 }
 0x198   :  { %v407_v18 = vsel %vm406_vm14, %v361_v6, %v355_v54  ;;  %v457_v19 = vadd.f32 %v456_v7, %v455_v62  ;;  %v460_v20 = vrot.slane %v459_v8, 2  ;;  %v339_v61 = vsub.f32 %v229_v17, %v317_v9 }
 0x199   :  { %v366_v3 = vrot.slane %v365_v13, 1  ;;  %v370_v21 = vrot.slane %v369_v14, 2  ;;  %v465_v22 = vadd.f32 %v546_v11, %v464_v15  ;;  %v374_v23 = vrot.slane %v346_v16, 4 }
 0x19a   :  { %v818_v24 = vsel %vm406_vm14, %v457_v19, %v451_v59  ;;  %v461_v25 = vadd.f32 %v460_v20, %v459_v8  ;;  %vm426_vm1 = vcmp.gt.f32.partialorder %v346_v16, 0.0  ;;  %v347_v26 = vmax.f32 %v339_v61, 0.0 }
 0x19b   :  { %v367_v27 = vadd.f32 %v366_v3, %v365_v13  ;;  %v371_v28 = vadd.f32 %v370_v21, %v369_v14  ;;  %v466_v29 = vrot.slane %v465_v22, 2  ;;  %v375_v30 = vadd.f32 %v374_v23, %v346_v16  ;;  %v236_v31 = vpop.permute.xlu1 %235 }
 0x19c   :  { %v462_v32 = vrot.slane %v461_v25, 1  ;;  %v547_v45 = vsel %vm426_vm1, 1.0, %v685_v0  ;;  %v380_v4 = vrot.slane %v347_v26, 4  ;;  %vm427_vm3 = vcmp.gt.f32.partialorder %v347_v26, 0.0 }
 0x19d   :  { %v372_v9 = vrot.slane %v371_v28, 1  ;;  %v467_v33 = vadd.f32 %v466_v29, %v465_v22  ;;  %v376_v35 = vrot.slane %v375_v30, 2  ;;  %v470_v36 = vrot.slane %v547_v45, 4 }
 0x19e   :  { %v463_v34 = vadd.f32 %v462_v32, %v461_v25  ;;  %v381_v37 = vadd.f32 %v380_v4, %v347_v26  ;;  %v548_v38 = vsel %vm427_vm3, 1.0, %v685_v0  ;;  %v340_v39 = vsub.f32 %v236_v31, %v795_v10 }
 0x19f   :  { %v373_v40 = vadd.f32 %v372_v9, %v371_v28  ;;  %v468_v41 = vrot.slane %v467_v33, 1  ;;  %v377_v42 = vadd.f32 %v376_v35, %v375_v30  ;;  %v471_v43 = vadd.f32 %v547_v45, %v470_v36  ;;  %v243_v44 = vpop.permute.xlu1 %242 }
 0x1a0   :  { %v382_v46 = vrot.slane %v381_v37, 2  ;;  %v476_v47 = vrot.slane %v548_v38, 4  ;;  %v348_v48 = vmax.f32 %v340_v39, 0.0  ;;  %v341_v49 = vsub.f32 %v243_v44, %v800_v12 }
 0x1a1   :  { %v469_v50 = vadd.f32 %v468_v41, %v467_v33  ;;  %v378_v51 = vrot.slane %v377_v42, 1  ;;  %v472_v52 = vrot.slane %v471_v43, 2  ;;  %v409_v53 = vsel %vm408_vm0, %v367_v27, %v407_v18 }
 0x1a2   :  { %v383_v54 = vadd.f32 %v382_v46, %v381_v37  ;;  %v477_v55 = vadd.f32 %v548_v38, %v476_v47  ;;  %v386_v56 = vrot.slane %v348_v48, 4  ;;  %vm428_vm6 = vcmp.gt.f32.partialorder %v348_v48, 0.0 }
 0x1a3   :  { %v379_v10 = vadd.f32 %v378_v51, %v377_v42  ;;  %v473_v57 = vadd.f32 %v472_v52, %v471_v43  ;;  %v549_v58 = vsel %vm428_vm6, 1.0, %v685_v0  ;;  %v349_v59 = vmax.f32 %v341_v49, 0.0 }
 0x1a4   :  { %v384_v60 = vrot.slane %v383_v54, 1  ;;  %v478_v62 = vrot.slane %v477_v55, 2  ;;  %v387_v63 = vadd.f32 %v386_v56, %v348_v48  ;;  %v482_v1 = vrot.slane %v549_v58, 4 }
 0x1a5   :  { %v474_v2 = vrot.slane %v473_v57, 1  ;;  %v392_v12 = vrot.slane %v349_v59, 4  ;;  %vm429_vm7 = vcmp.gt.f32.partialorder %v349_v59, 0.0  ;;  %v411_v5 = vsel %vm410_vm2, %v373_v40, %v409_v53 }
 0x1a6   :  { %v385_v6 = vadd.f32 %v384_v60, %v383_v54  ;;  %v479_v7 = vadd.f32 %v478_v62, %v477_v55  ;;  %v388_v8 = vrot.slane %v387_v63, 2  ;;  %v483_v11 = vadd.f32 %v549_v58, %v482_v1 }
 0x1a7   :  { %v475_v13 = vadd.f32 %v474_v2, %v473_v57  ;;  %v393_v14 = vadd.f32 %v392_v12, %v349_v59  ;;  %v550_v15 = vsel %vm429_vm7, 1.0, %v685_v0  ;;  %v413_v16 = vsel %vm412_vm4, %v379_v10, %v411_v5 }
 0x1a8   :  { %v480_v17 = vrot.slane %v479_v7, 1  ;;  %v389_v18 = vadd.f32 %v388_v8, %v387_v63  ;;  %v484_v19 = vrot.slane %v483_v11, 2  ;;  %v488_v20 = vrot.slane %v550_v15, 4 }
 0x1a9   :  { %v394_v61 = vrot.slane %v393_v14, 2  ;;  %v415_v3 = vsel %vm414_vm5, %v385_v6, %v413_v16  ;;  %v503_v21 = vsel %vm408_vm0, %v463_v34, %v818_v24 }
 0x1aa   :  { %v481_v22 = vadd.f32 %v480_v17, %v479_v7  ;;  %v390_v23 = vrot.slane %v389_v18, 1  ;;  %v485_v25 = vadd.f32 %v484_v19, %v483_v11  ;;  %v489_v26 = vadd.f32 %v550_v15, %v488_v20 }
 0x1ab   :  { %v395_v27 = vadd.f32 %v394_v61, %v393_v14  ;;  %v504_v0 = vsel %vm410_vm2, %v469_v50, %v503_v21 }
 0x1ac   :  { %v490_v28 = vrot.slane %v489_v26, 2  ;;  %v391_v29 = vadd.f32 %v390_v23, %v389_v18  ;;  %v486_v30 = vrot.slane %v485_v25, 1  ;;  %v505_v31 = vsel %vm412_vm4, %v475_v13, %v504_v0 }
 0x1ad   :  { %v396_v32 = vrot.slane %v395_v27, 1  ;;  %v506_v45 = vsel %vm414_vm5, %v481_v22, %v505_v31 }
 0x1ae   :  { %v417_v24 = vsel %vm416_vm8, %v391_v29, %v415_v3  ;;  %v487_v4 = vadd.f32 %v486_v30, %v485_v25  ;;  %v491_v9 = vadd.f32 %v490_v28, %v489_v26 }
 0x1af   :  { %v397_v33 = vadd.f32 %v396_v32, %v395_v27 }
 0x1b0   :  { %v492_v35 = vrot.slane %v491_v9, 1  ;;  %v507_v36 = vsel %vm416_vm8, %v487_v4, %v506_v45 }
 0x1b1   :  { %v419_v34 = vsel %vm418_vm9, %v397_v33, %v417_v24 }
 0x1b2   :  { %421 = vst [vmem:[#allocation7] sm:$0xff] %v419_v34  ;;  %v493_v37 = vadd.f32 %v492_v35, %v491_v9 }
 0x1b3   :  { %647 = shalt.err (!%p644_p9)
}
 0x1b4   :  { %520 = dma.vmem_to_hbm [thread:$0]  %s518_s4, 128, %s850_s5, [#allocation6]   ;;  %v508_v38 = vsel %vm418_vm9, %v493_v37, %v507_v36 }
 0x1b5   :  { %510 = vst [vmem:[#allocation8] sm:$0xff] %v508_v38  ;;  %s656_s14 = scalar_lea.vmem %s528_s10, 128  ;;  %p661_p11 = scmp.lt.s32.totalorder %s528_s10, %s528_s10 }
 0x1b6   :  { %p657_p10 = scmp.ne.s32.totalorder %s528_s10, %s656_s14  ;;  %p662_p12 = scmp.lt.s32.totalorder %s656_s14, %s656_s14 }
 0x1b8   :  { %p663_p13 = por %p662_p12, %p661_p11 }
 0x1ba   :  { %p664_p0 = pnand %p663_p13, %p657_p10 }
 0x1bc   :  { %667 = shalt.err (!%p664_p0)
}
 0x1bd   :  { %530 = dma.vmem_to_hbm [thread:$0]  %s528_s10, 128, %s851_s6, [#allocation9]  }
 0x1be   :  { %678 = dma.done.wait [#allocation6], 128  }
 0x1bf   :  { %679 = vsyncadd [#allocation6], 4294967168 }
 0x1c0   :  { %680 = dma.done.wait [#allocation9], 128  }
 0x1c1   :  { %681 = vsyncadd [#allocation9], 4294967168 }
 0x1c2   :  { %537 = vsyncpa [#allocation5], 1 }
 0x1c3   :  { %538 = vsyncpa [#allocation6], 1 }
 0x1c4   :  { %539 = vsyncpa [#allocation9], 1 }

// kernel: tpu_custom_call.1
= control target key start
LH: loop header
LB: loop body
LE: loop exit
PB: predicated region body
PF: predicated region fallthrough
CT: control target
= control target key end

     0   :  { %12 = vsyncpa [#allocation5], 0  ;;  %s2951_s0 = inlined_call_operand.vmem [shape: f32[8,128], index: 0, kind: input, shape index: {}]   ;;  %s2952_s1 = inlined_call_operand.hbm [shape: f32[128,128], index: 1, kind: input, shape index: {}]   ;;  %s2953_s2 = inlined_call_operand.vmem [shape: f32[1,128], index: 2, kind: input, shape index: {}]   ;;  %s2954_s3 = inlined_call_operand.vmem [shape: s32[8,1], index: 3, kind: input, shape index: {}]   ;;  %s2955_s4 = inlined_call_operand.vmem [shape: s32[1,128], index: 4, kind: input, shape index: {}]   ;;  %s2956_s5 = inlined_call_operand.hbm [shape: f32[8,128], index: 5, kind: output, shape index: {0}]   ;;  %s2957_s6 = inlined_call_operand.hbm [shape: f32[8,128], index: 6, kind: output, shape index: {1}]  }
   0x1   :  { %13 = vsyncpa [#allocation6], 0 }
   0x2   :  { %14 = vsyncpa [#allocation9], 0  ;;  %s2122_s21 = smov [#allocation4]  }
   0x3   :  { %s22_s22 = sshll.u32 %s2122_s21, 4  ;;  %s23_s22 = int_to_ptr.vmem [resolvable:$true] %s22_s22 }
   0x4   :  { %s2064_s23 = scalar_lea.vmem %s23_s22, 2048  ;;  %p2069_p1 = scmp.lt.s32.totalorder %s23_s22, %s23_s22 }
   0x5   :  { %p2065_p0 = scmp.ne.s32.totalorder %s23_s22, %s2064_s23  ;;  %p2070_p2 = scmp.lt.s32.totalorder %s2064_s23, %s2064_s23 }
   0x7   :  { %p2071_p3 = por %p2070_p2, %p2069_p1 }
   0x9   :  { %p2072_p4 = pnand %p2071_p3, %p2065_p0 }
   0xb   :  { %2075 = shalt.err (!%p2072_p4)
}
   0xc   :  { %s2123_s24 = smov 128   ;;  %s2124_s25 = smov 8  }
   0xd   :  { %28 = dma.hbm_to_vmem [thread:$0]  %s2952_s1, 2048, %s23_s22, [#allocation5], %s2123_s24, %s2123_s24, %s2124_s25  }
   0xe   :  { %2116 = dma.done.wait [#allocation5], 2048  }
   0xf   :  { %2117 = vsyncadd [#allocation5], 4294965248  ;;  %v2125_v0 = vmov 0.0   ;;  %vm2126_vm0 = vmmov 0   ;;  %v2127_v1 = vmov 0   ;;  %v58_v2 = vld [vmem:[#allocation4 + $0x78] sm:$0xff]  ;;  %v163_v21 = vlaneseq }
  0x10   :  { %2008 = vmatprep.subr.mxu0 %v2125_v0  ;;  %2040 = vmatprep.mubr.msk.f32.mxu0 %vm2126_vm0, %v2125_v0  ;;  %v57_v3 = vld [vmem:[#allocation4 + $0x70] sm:$0xff]  ;;  %v56_v4 = vld [vmem:[#allocation4 + $0x68] sm:$0xff]  ;;  %v55_v5 = vld [vmem:[#allocation4 + $0x60] sm:$0xff]  ;;  %vm2128_vm3 = vmmov 1   ;;  %v2129_v35 = vmov 1966171168  }
  0x11   :  { %2053 = vset.pattern.permute.xlu0 %v2127_v1  ;;  %2009 = vmatpush3.msra.mxu0 %v58_v2  ;;  %v42_v6 = vld [vmem:[%s2951_s0] sm:$0xff]  ;;  %v54_v7 = vld [vmem:[#allocation4 + $0x58] sm:$0xff]  ;;  %v53_v9 = vld [vmem:[#allocation4 + $0x50] sm:$0xff]  ;;  %v168_v24 = vand.u32 127, %v163_v21  ;;  %v2205_v34 = vshrl.u32 %v163_v21, 7  ;;  %v727_v36 = vunpack.c.l.s4 %v2129_v35  ;;  %s2131_s9 = smov [#allocation8]  }
  0x12   :  { %2010 = vmatprep.subr.mxu0 %v2125_v0  ;;  %v129_v8 = vmul.f32 %v42_v6, %v42_v6  ;;  %v52_v10 = vld [vmem:[#allocation4 + $0x48] sm:$0xff]  ;;  %v51_v11 = vld [vmem:[#allocation4 + $0x40] sm:$0xff]  ;;  %v50_v12 = vld [vmem:[#allocation4 + $0x38] sm:$0xff]  ;;  %s1847_s10 = sshll.u32 %s2131_s9, 4  ;;  %s1848_s10 = int_to_ptr.vmem [resolvable:$true] %s1847_s10 }
  0x13   :  { %2011 = vmatpush3.msra.mxu0 %v57_v3  ;;  %v49_v13 = vld [vmem:[#allocation4 + $0x30] sm:$0xff]  ;;  %v48_v14 = vld [vmem:[#allocation4 + $0x28] sm:$0xff]  ;;  %v47_v15 = vld [vmem:[#allocation4 + $0x20] sm:$0xff]  ;;  %vm169_vm2 = vcmp.lt.s32.totalorder %v168_v24, 8  ;;  %vm170_vm6 = vcmp.ne.s32.totalorder %v2205_v34, %v168_v24  ;;  %v728_v37 = vunpack.c.0.s8 %v727_v36  ;;  %v190_v43 = vsub.s32 0, %v2205_v34 }
  0x14   :  { %2012 = vmatprep.subr.mxu0 %v2125_v0  ;;  %130 = vadd.xlane.f32.xlu0 %v129_v8  ;;  %v46_v16 = vld [vmem:[#allocation4 + $0x18] sm:$0xff]  ;;  %v45_v17 = vld [vmem:[#allocation4 + $0x10] sm:$0xff]  ;;  %v44_v18 = vld [vmem:[#allocation4 + $0x8] sm:$0xff]  ;;  %v391_v45 = vsub.s32 3, %v2205_v34  ;;  %v458_v46 = vsub.s32 4, %v2205_v34  ;;  %v525_v47 = vsub.s32 5, %v2205_v34 }
  0x15   :  { %2013 = vmatpush3.msra.mxu0 %v56_v4  ;;  %v152_v19 = vld [vmem:[%s2954_s3] sm:$0xff]  ;;  %v731_v41 = vsub.s32 %v728_v37, %v2205_v34  ;;  %v592_v49 = vsub.s32 6, %v2205_v34  ;;  %v659_v50 = vsub.s32 7, %v2205_v34  ;;  %v257_v2 = vsub.s32 1, %v2205_v34 }
  0x16   :  { %2014 = vmatprep.subr.mxu0 %v2125_v0  ;;  %v43_v20 = vld [vmem:[#allocation4] sm:$0xff] }
  0x17   :  { %2015 = vmatpush3.msra.mxu0 %v55_v5  ;;  %v1862_v23 = vld [vmem:[%s2955_s4] ss:$0 sm:$0xff] }
  0x18   :  { %2016 = vmatprep.subr.mxu0 %v2125_v0  ;;  %v1861_v29 = vld [vmem:[%s2953_s2] ss:$0 sm:$0xff]  ;;  %s2130_s2 = smov [#allocation7]  }
  0x19   :  { %2017 = vmatpush3.msra.mxu0 %v54_v7  ;;  %s1837_s4 = sshll.u32 %s2130_s2, 4  ;;  %s1838_s4 = int_to_ptr.vmem [resolvable:$true] %s1837_s4 }
  0x1a   :  { %2018 = vmatprep.subr.mxu0 %v2125_v0  ;;  %s2076_s11 = scalar_lea.vmem %s1838_s4, 128  ;;  %p2081_p6 = scmp.lt.s32.totalorder %s1838_s4, %s1838_s4 }
  0x1b   :  { %2019 = vmatpush3.msra.mxu0 %v53_v9  ;;  %p2077_p5 = scmp.ne.s32.totalorder %s1838_s4, %s2076_s11  ;;  %p2082_p7 = scmp.lt.s32.totalorder %s2076_s11, %s2076_s11 }
  0x1c   :  { %2020 = vmatprep.subr.mxu0 %v2125_v0 }
  0x1d   :  { %2021 = vmatpush3.msra.mxu0 %v52_v10  ;;  %p2083_p8 = por %p2082_p7, %p2081_p6 }
  0x1e   :  { %2022 = vmatprep.subr.mxu0 %v2125_v0 }
  0x1f   :  { %2023 = vmatpush3.msra.mxu0 %v51_v11  ;;  %p2084_p9 = pnand %p2083_p8, %p2077_p5 }
  0x20   :  { %2024 = vmatprep.subr.mxu0 %v2125_v0 }
  0x21   :  { %2025 = vmatpush3.msra.mxu0 %v50_v12 }
  0x22   :  { %2026 = vmatprep.subr.mxu0 %v2125_v0 }
  0x23   :  { %2027 = vmatpush3.msra.mxu0 %v49_v13 }
  0x24   :  { %2028 = vmatprep.subr.mxu0 %v2125_v0 }
  0x25   :  { %2029 = vmatpush3.msra.mxu0 %v48_v14 }
  0x26   :  { %2030 = vmatprep.subr.mxu0 %v2125_v0 }
  0x27   :  { %2031 = vmatpush3.msra.mxu0 %v47_v15 }
  0x28   :  { %2032 = vmatprep.subr.mxu0 %v2125_v0 }
  0x29   :  { %2033 = vmatpush3.msra.mxu0 %v46_v16 }
  0x2a   :  { %2034 = vmatprep.subr.mxu0 %v2125_v0  ;;  %155 = vperm.xlu0 %2053, %v152_v19  }
  0x2b   :  { %2035 = vmatpush3.msra.mxu0 %v45_v17 }
  0x2c   :  { %2036 = vmatprep.subr.mxu0 %v2125_v0 }
  0x2d   :  { %2037 = vmatpush3.msra.mxu0 %v44_v18 }
  0x2e   :  { %2038 = vmatprep.subr.mxu0 %v2125_v0 }
  0x2f   :  { %2039 = vmatpush3.msra.mxu0 %v43_v20  ;;  %v324_v20 = vsub.s32 2, %v2205_v34 }
  0x30   :  { %2041 = vmatmul.mubr.f32.vlgmr.msra.gmra.mxu0 %v42_v6 }
  0x9d   :  { %v131_v22 = vpop.xlane.xlu0 %130 }
  0xa5   :  { %v156_v25 = vpop.permute.xlu0 %155 }
  0xa6   :  { %vm161_vm1 = vcmp.eq.s32.totalorder %v156_v25, %v1862_v23 }
  0xa7   :  { %vm175_vm4 = vmxor %vm161_vm1, %vm2128_vm3 }
  0xa8   :  { %vm2198_vm5 = vmand %vm175_vm4, %vm169_vm2 }
  0xa9   :  { %vm171_vm8 = vmand %vm161_vm1, %vm170_vm6 }
  0xaa   :  { %vm174_vm10 = vmand %vm171_vm8, %vm169_vm2 }
  0xf0   :  { %v125_v27 = vpop.f32.mrf.mxu0 }
  0xf1   :  { %v133_v28 = vmul.f32 2.0, %v125_v27 }
  0xf2   :  { %v2042_v30 = vpop.f32.mrf.mxu0 }
  0xf3   :  { %v134_v31 = vsub.f32 %v131_v22, %v133_v28 }
  0xf5   :  { %v141_v32 = vadd.f32 %v1861_v29, %v134_v31 }
  0xf7   :  { %v142_v33 = vmax.f32 %v141_v32, 0.0 }
  0xf9   :  { %2054 = vrsqrt.f32 %v142_v33  ;;  %vm146_vm7 = vcmp.eq.f32.partialorder %v142_v33, inf  ;;  %v149_v40 = vand.u32 2147483648, %v142_v33  ;;  %vm143_vm9 = vcmp.eq.f32.partialorder %v142_v33, 0.0 }
 0x106   :  { %v2055_v38 = vpop.eup %2054 }
 0x107   :  { %v145_v39 = vmul.f32 %v2055_v38, %v142_v33 }
 0x109   :  { %v147_v42 = vsel %vm146_vm7, %v142_v33, %v145_v39 }
 0x10a   :  { %v150_v44 = vsel %vm143_vm9, %v149_v40, %v147_v42 }
 0x10b   :  { %v151_v48 = vsel %vm143_vm9, 0.0, %v150_v44 }
 0x10c   :  { %v177_v51 = vadd.f32 1.0, %v151_v48  ;;  %v180_v52 = vsel %vm2198_vm5, %v151_v48, 1e+09 }
 0x10d   :  { %v725_v53 = vcombine.high %v180_v52, %v180_v52  ;;  %v732_v54 = vrot.slane %v180_v52, %v731_v41 }
 0x10e   :  { %v178_v55 = vsel %vm174_vm10, %v177_v51, -1e+09 }
 0x10f   :  { %v191_v56 = vrot.slane %v178_v55, %v190_v43  ;;  %v2219_v57 = vrot.slane %v178_v55, %v391_v45  ;;  %v2221_v58 = vrot.slane %v178_v55, %v458_v46  ;;  %v2223_v59 = vrot.slane %v178_v55, %v525_v47 }
 0x110   :  { %v2225_v60 = vrot.slane %v178_v55, %v592_v49  ;;  %v2227_v61 = vrot.slane %v178_v55, %v659_v50  ;;  %v739_v62 = vrot.slane %v725_v53, %v731_v41  ;;  %v740_v63 = vcombine.high %v732_v54, %v732_v54 }
 0x111   :  { %v748_v1 = vrot.slane %v732_v54, %v731_v41  ;;  %241 = vbcast.lane.b32.xlu0 %v191_v56, 352  ;;  %193 = vbcast.lane.b32.xlu1 %v191_v56, 256  ;;  %v258_v12 = vrot.slane %v178_v55, %v257_v2  ;;  %v325_v21 = vrot.slane %v178_v55, %v324_v20 }
 0x112   :  { %v741_v3 = vcombine.high %v739_v62, %v739_v62  ;;  %v755_v4 = vrot.slane %v739_v62, %v731_v41  ;;  %v762_v5 = vrot.slane %v740_v63, %v731_v41 }
 0x113   :  { %v770_v6 = vcombine.high %v748_v1, %v748_v1  ;;  %v2230_v7 = vrot.slane %v748_v1, %v190_v43 }
 0x114   :  { %v769_v8 = vrot.slane %v741_v3, %v731_v41  ;;  %v771_v9 = vcombine.high %v755_v4, %v755_v4  ;;  %v772_v10 = vcombine.high %v762_v5, %v762_v5  ;;  %v2232_v11 = vrot.slane %v762_v5, %v190_v43 }
 0x115   :  { %249 = vbcast.lane.b32.xlu0 %v191_v56, 368  ;;  %v2234_v13 = vrot.slane %v770_v6, %v190_v43  ;;  %v2236_v14 = vrot.slane %v755_v4, %v190_v43  ;;  %197 = vbcast.lane.b32.xlu1 %v191_v56, 264 }
 0x116   :  { %v773_v15 = vcombine.high %v769_v8, %v769_v8  ;;  %v2238_v16 = vrot.slane %v772_v10, %v190_v43  ;;  %v2240_v17 = vrot.slane %v769_v8, %v190_v43  ;;  %v2242_v18 = vrot.slane %v771_v9, %v190_v43 }
 0x118   :  { %v2244_v19 = vrot.slane %v773_v15, %v190_v43 }
 0x119   :  { %260 = vbcast.lane.b32.xlu0 %v258_v12, 256  ;;  %201 = vbcast.lane.b32.xlu1 %v191_v56, 272 }
 0x11d   :  { %268 = vbcast.lane.b32.xlu0 %v258_v12, 272  ;;  %205 = vbcast.lane.b32.xlu1 %v191_v56, 280 }
 0x121   :  { %276 = vbcast.lane.b32.xlu0 %v258_v12, 288  ;;  %209 = vbcast.lane.b32.xlu1 %v191_v56, 288 }
 0x125   :  { %284 = vbcast.lane.b32.xlu0 %v258_v12, 304  ;;  %213 = vbcast.lane.b32.xlu1 %v191_v56, 296 }
 0x129   :  { %292 = vbcast.lane.b32.xlu0 %v258_v12, 320  ;;  %217 = vbcast.lane.b32.xlu1 %v191_v56, 304 }
 0x12d   :  { %300 = vbcast.lane.b32.xlu0 %v258_v12, 336  ;;  %221 = vbcast.lane.b32.xlu1 %v191_v56, 312 }
 0x131   :  { %308 = vbcast.lane.b32.xlu0 %v258_v12, 352  ;;  %225 = vbcast.lane.b32.xlu1 %v191_v56, 320 }
 0x135   :  { %316 = vbcast.lane.b32.xlu0 %v258_v12, 368  ;;  %229 = vbcast.lane.b32.xlu1 %v191_v56, 328 }
 0x139   :  { %327 = vbcast.lane.b32.xlu0 %v325_v21, 256  ;;  %233 = vbcast.lane.b32.xlu1 %v191_v56, 336 }
 0x13d   :  { %335 = vbcast.lane.b32.xlu0 %v325_v21, 272  ;;  %237 = vbcast.lane.b32.xlu1 %v191_v56, 344 }
 0x141   :  { %343 = vbcast.lane.b32.xlu0 %v325_v21, 288  ;;  %245 = vbcast.lane.b32.xlu1 %v191_v56, 360 }
 0x145   :  { %351 = vbcast.lane.b32.xlu0 %v325_v21, 304  ;;  %253 = vbcast.lane.b32.xlu1 %v191_v56, 376 }
 0x149   :  { %359 = vbcast.lane.b32.xlu0 %v325_v21, 320  ;;  %264 = vbcast.lane.b32.xlu1 %v258_v12, 264 }
 0x14d   :  { %367 = vbcast.lane.b32.xlu0 %v325_v21, 336  ;;  %272 = vbcast.lane.b32.xlu1 %v258_v12, 280 }
 0x151   :  { %375 = vbcast.lane.b32.xlu0 %v325_v21, 352  ;;  %280 = vbcast.lane.b32.xlu1 %v258_v12, 296 }
 0x155   :  { %383 = vbcast.lane.b32.xlu0 %v325_v21, 368  ;;  %288 = vbcast.lane.b32.xlu1 %v258_v12, 312 }
 0x159   :  { %394 = vbcast.lane.b32.xlu0 %v2219_v57, 256  ;;  %296 = vbcast.lane.b32.xlu1 %v258_v12, 328 }
 0x15d   :  { %402 = vbcast.lane.b32.xlu0 %v2219_v57, 272  ;;  %304 = vbcast.lane.b32.xlu1 %v258_v12, 344 }
 0x161   :  { %410 = vbcast.lane.b32.xlu0 %v2219_v57, 288  ;;  %312 = vbcast.lane.b32.xlu1 %v258_v12, 360 }
 0x165   :  { %418 = vbcast.lane.b32.xlu0 %v2219_v57, 304  ;;  %320 = vbcast.lane.b32.xlu1 %v258_v12, 376 }
 0x169   :  { %426 = vbcast.lane.b32.xlu0 %v2219_v57, 320  ;;  %331 = vbcast.lane.b32.xlu1 %v325_v21, 264 }
 0x16d   :  { %434 = vbcast.lane.b32.xlu0 %v2219_v57, 336  ;;  %339 = vbcast.lane.b32.xlu1 %v325_v21, 280 }
 0x171   :  { %442 = vbcast.lane.b32.xlu0 %v2219_v57, 352  ;;  %347 = vbcast.lane.b32.xlu1 %v325_v21, 296 }
 0x175   :  { %450 = vbcast.lane.b32.xlu0 %v2219_v57, 368  ;;  %355 = vbcast.lane.b32.xlu1 %v325_v21, 312 }
 0x179   :  { %461 = vbcast.lane.b32.xlu0 %v2221_v58, 256  ;;  %363 = vbcast.lane.b32.xlu1 %v325_v21, 328 }
 0x17d   :  { %469 = vbcast.lane.b32.xlu0 %v2221_v58, 272  ;;  %371 = vbcast.lane.b32.xlu1 %v325_v21, 344 }
 0x181   :  { %477 = vbcast.lane.b32.xlu0 %v2221_v58, 288  ;;  %379 = vbcast.lane.b32.xlu1 %v325_v21, 360 }
 0x183   :  { %v2258_v22 = vpop.permute.xlu0 %241  ;;  %v194_v23 = vpop.permute.xlu1 %193 }
 0x184   :  { %v814_v41 = vsub.f32 %v194_v23, %v2230_v7  ;;  %v826_v51 = vsub.f32 %v2258_v22, %v2230_v7 }
 0x185   :  { %485 = vbcast.lane.b32.xlu0 %v2221_v58, 304  ;;  %387 = vbcast.lane.b32.xlu1 %v325_v21, 376 }
 0x186   :  { %v942_v48 = vmax.f32 %v814_v41, 0.0  ;;  %v2323_v3 = vmax.f32 %v826_v51, 0.0 }
 0x187   :  { %v2261_v24 = vpop.permute.xlu0 %249  ;;  %v198_v25 = vpop.permute.xlu1 %197 }
 0x188   :  { %v815_v38 = vsub.f32 %v198_v25, %v2230_v7  ;;  %vm1262_vm12 = vcmp.gt.f32.partialorder %v942_v48, 0.0  ;;  %v828_v23 = vsub.f32 %v2261_v24, %v2230_v7  ;;  %vm1274_vm2 = vcmp.gt.f32.partialorder %v2323_v3, 0.0 }
 0x189   :  { %493 = vbcast.lane.b32.xlu0 %v2221_v58, 320  ;;  %398 = vbcast.lane.b32.xlu1 %v2219_v57, 264  ;;  %v1863_v8 = vsel %vm1262_vm12, 1.0, %v2125_v0 }
 0x18a   :  { %v943_v43 = vmax.f32 %v815_v38, 0.0 }
 0x18b   :  { %v2265_v26 = vpop.permute.xlu0 %260  ;;  %v202_v27 = vpop.permute.xlu1 %201 }
 0x18c   :  { %v816_v42 = vsub.f32 %v202_v27, %v2230_v7  ;;  %vm1263_vm11 = vcmp.gt.f32.partialorder %v943_v43, 0.0  ;;  %v1070_v63 = vadd.f32 %v943_v43, %v942_v48  ;;  %v830_v2 = vsub.f32 %v2265_v26, %v2232_v11 }
 0x18d   :  { %532 = vbcast.lane.b32.xlu0 %v2223_v59, 264  ;;  %406 = vbcast.lane.b32.xlu1 %v2219_v57, 280  ;;  %v1864_v1 = vsel %vm1263_vm11, 1.0, %v2125_v0 }
 0x18e   :  { %v944_v49 = vmax.f32 %v816_v42, 0.0  ;;  %v1646_v20 = vadd.f32 %v1864_v1, %v1863_v8  ;;  %v2337_v25 = vmax.f32 %v830_v2, 0.0 }
 0x18f   :  { %v2269_v28 = vpop.permute.xlu0 %268  ;;  %v206_v29 = vpop.permute.xlu1 %205 }
 0x190   :  { %v817_v44 = vsub.f32 %v206_v29, %v2230_v7  ;;  %vm1264_vm13 = vcmp.gt.f32.partialorder %v944_v49, 0.0  ;;  %v1071_v9 = vadd.f32 %v1070_v63, %v944_v49  ;;  %vm1278_vm4 = vcmp.gt.f32.partialorder %v2337_v25, 0.0 }
 0x191   :  { %599 = vbcast.lane.b32.xlu0 %v2225_v60, 264  ;;  %414 = vbcast.lane.b32.xlu1 %v2219_v57, 296  ;;  %v1865_v10 = vsel %vm1264_vm13, 1.0, %v2125_v0 }
 0x192   :  { %v945_v52 = vmax.f32 %v817_v44, 0.0  ;;  %v1647_v29 = vadd.f32 %v1865_v10, %v1646_v20 }
 0x193   :  { %v2273_v30 = vpop.permute.xlu0 %276  ;;  %v210_v31 = vpop.permute.xlu1 %209 }
 0x194   :  { %v818_v50 = vsub.f32 %v210_v31, %v2230_v7  ;;  %vm1265_vm14 = vcmp.gt.f32.partialorder %v945_v52, 0.0  ;;  %v1072_v26 = vadd.f32 %v1071_v9, %v945_v52  ;;  %v2382_v9 = vsel %vm1274_vm2, 1.0, %v2125_v0 }
 0x195   :  { %662 = vbcast.lane.b32.xlu0 %v2227_v61, 256  ;;  %422 = vbcast.lane.b32.xlu1 %v2219_v57, 312  ;;  %v1866_v27 = vsel %vm1265_vm14, 1.0, %v2125_v0 }
 0x196   :  { %v1648_v42 = vadd.f32 %v1866_v27, %v1647_v29 }
 0x197   :  { %v2277_v32 = vpop.permute.xlu0 %284  ;;  %v214_v33 = vpop.permute.xlu1 %213 }
 0x198   :  { %v819_v53 = vsub.f32 %v214_v33, %v2230_v7 }
 0x199   :  { %603 = vbcast.lane.b32.xlu0 %v2225_v60, 272  ;;  %430 = vbcast.lane.b32.xlu1 %v2219_v57, 328 }
 0x19a   :  { %v947_v4 = vmax.f32 %v819_v53, 0.0 }
 0x19b   :  { %v2281_v34 = vpop.permute.xlu0 %292  ;;  %v218_v35 = vpop.permute.xlu1 %217 }
 0x19c   :  { %v820_v62 = vsub.f32 %v218_v35, %v2230_v7  ;;  %vm1267_vm0 = vcmp.gt.f32.partialorder %v947_v4, 0.0 }
 0x19d   :  { %670 = vbcast.lane.b32.xlu0 %v2227_v61, 272  ;;  %438 = vbcast.lane.b32.xlu1 %v2219_v57, 344  ;;  %v1868_v48 = vsel %vm1267_vm0, 1.0, %v2125_v0 }
 0x19e   :  { %v948_v21 = vmax.f32 %v820_v62, 0.0 }
 0x19f   :  { %v2285_v36 = vpop.permute.xlu0 %300  ;;  %v222_v37 = vpop.permute.xlu1 %221 }
 0x1a0   :  { %v821_v5 = vsub.f32 %v222_v37, %v2230_v7  ;;  %v832_v37 = vsub.f32 %v2269_v28, %v2232_v11  ;;  %vm1268_vm1 = vcmp.gt.f32.partialorder %v948_v21, 0.0  ;;  %v2358_v28 = vmax.f32 %v828_v23, 0.0 }
 0x1a1   :  { %544 = vbcast.lane.b32.xlu0 %v2223_v59, 288  ;;  %446 = vbcast.lane.b32.xlu1 %v2219_v57, 360 }
 0x1a2   :  { %v949_v31 = vmax.f32 %v821_v5, 0.0  ;;  %v960_v63 = vmax.f32 %v832_v37, 0.0  ;;  %vm1276_vm7 = vcmp.gt.f32.partialorder %v2358_v28, 0.0 }
 0x1a3   :  { %v2290_v39 = vpop.permute.xlu0 %308  ;;  %v2292_v40 = vpop.permute.xlu1 %225 }
 0x1a4   :  { %v822_v22 = vsub.f32 %v2292_v40, %v2230_v7  ;;  %vm1269_vm3 = vcmp.gt.f32.partialorder %v949_v31, 0.0  ;;  %vm1280_vm8 = vcmp.gt.f32.partialorder %v960_v63, 0.0 }
 0x1a5   :  { %611 = vbcast.lane.b32.xlu0 %v2225_v60, 288  ;;  %454 = vbcast.lane.b32.xlu1 %v2219_v57, 376  ;;  %v946_v57 = vmax.f32 %v818_v50, 0.0  ;;  %v1870_v8 = vsel %vm1269_vm3, 1.0, %v2125_v0 }
 0x1a6   :  { %v950_v43 = vmax.f32 %v822_v22, 0.0 }
 0x1a7   :  { %v2299_v45 = vpop.permute.xlu0 %316  ;;  %v2303_v47 = vpop.permute.xlu1 %229  ;;  %vm1266_vm15 = vcmp.gt.f32.partialorder %v946_v57, 0.0  ;;  %v1073_v24 = vadd.f32 %v1072_v26, %v946_v57 }
 0x1a8   :  { %v844_v46 = vsub.f32 %v2299_v45, %v2232_v11  ;;  %v823_v33 = vsub.f32 %v2303_v47, %v2230_v7  ;;  %v1867_v38 = vsel %vm1266_vm15, 1.0, %v2125_v0  ;;  %vm1270_vm5 = vcmp.gt.f32.partialorder %v950_v43, 0.0 }
 0x1a9   :  { %678 = vbcast.lane.b32.xlu0 %v2227_v61, 288  ;;  %465 = vbcast.lane.b32.xlu1 %v2221_v58, 264  ;;  %v1074_v47 = vadd.f32 %v1073_v24, %v947_v4  ;;  %v1649_v49 = vadd.f32 %v1867_v38, %v1648_v42  ;;  %v834_v4 = vsub.f32 %v2273_v30, %v2232_v11  ;;  %v1879_v30 = vsel %vm1278_vm4, 1.0, %v2125_v0 }
 0x1aa   :  { %v951_v50 = vmax.f32 %v823_v33, 0.0  ;;  %v1871_v22 = vsel %vm1270_vm5, 1.0, %v2125_v0  ;;  %v836_v38 = vsub.f32 %v2277_v32, %v2232_v11 }
 0x1ab   :  { %v2311_v54 = vpop.permute.xlu0 %327  ;;  %v2315_v56 = vpop.permute.xlu1 %233  ;;  %v1075_v53 = vadd.f32 %v1074_v47, %v948_v21  ;;  %v1650_v1 = vadd.f32 %v1868_v48, %v1649_v49  ;;  %v838_v47 = vsub.f32 %v2281_v34, %v2232_v11 }
 0x1ac   :  { %v846_v55 = vsub.f32 %v2311_v54, %v2234_v13  ;;  %v824_v44 = vsub.f32 %v2315_v56, %v2230_v7  ;;  %v1869_v56 = vsel %vm1268_vm1, 1.0, %v2125_v0  ;;  %vm1271_vm6 = vcmp.gt.f32.partialorder %v951_v50, 0.0 }
 0x1ad   :  { %552 = vbcast.lane.b32.xlu0 %v2223_v59, 304  ;;  %473 = vbcast.lane.b32.xlu1 %v2221_v58, 280  ;;  %v1076_v5 = vadd.f32 %v1075_v53, %v949_v31  ;;  %v1651_v10 = vadd.f32 %v1869_v56, %v1650_v1  ;;  %v962_v31 = vmax.f32 %v834_v4, 0.0  ;;  %v1872_v37 = vsel %vm1271_vm6, 1.0, %v2125_v0 }
 0x1ae   :  { %v952_v2 = vmax.f32 %v824_v44, 0.0 }
 0x1af   :  { %v2326_v6 = vpop.permute.xlu0 %335  ;;  %v238_v15 = vpop.permute.xlu1 %237  ;;  %v1077_v21 = vadd.f32 %v1076_v5, %v950_v43  ;;  %v1652_v27 = vadd.f32 %v1870_v8, %v1651_v10  ;;  %vm1282_vm12 = vcmp.gt.f32.partialorder %v962_v31, 0.0 }
 0x1b0   :  { %v848_v12 = vsub.f32 %v2326_v6, %v2234_v13  ;;  %v825_v51 = vsub.f32 %v238_v15, %v2230_v7  ;;  %vm1272_vm9 = vcmp.gt.f32.partialorder %v952_v2, 0.0 }
 0x1b1   :  { %619 = vbcast.lane.b32.xlu0 %v2225_v60, 304  ;;  %481 = vbcast.lane.b32.xlu1 %v2221_v58, 296  ;;  %v1078_v33 = vadd.f32 %v1077_v21, %v951_v50  ;;  %v1653_v42 = vadd.f32 %v1871_v22, %v1652_v27  ;;  %v1873_v49 = vsel %vm1272_vm9, 1.0, %v2125_v0  ;;  %v964_v22 = vmax.f32 %v836_v38, 0.0 }
 0x1b2   :  { %v953_v15 = vmax.f32 %v825_v51, 0.0 }
 0x1b3   :  { %v2344_v35 = vpop.permute.xlu0 %343  ;;  %v2352_v41 = vpop.permute.xlu1 %245  ;;  %v1079_v48 = vadd.f32 %v1078_v33, %v952_v2  ;;  %v1654_v51 = vadd.f32 %v1872_v37, %v1653_v42  ;;  %vm1284_vm15 = vcmp.gt.f32.partialorder %v964_v22, 0.0 }
 0x1b4   :  { %v850_v40 = vsub.f32 %v2344_v35, %v2234_v13  ;;  %v827_v24 = vsub.f32 %v2352_v41, %v2230_v7  ;;  %vm1273_vm10 = vcmp.gt.f32.partialorder %v953_v15, 0.0 }
 0x1b5   :  { %686 = vbcast.lane.b32.xlu0 %v2227_v61, 304  ;;  %489 = vbcast.lane.b32.xlu1 %v2221_v58, 312  ;;  %v1080_v56 = vadd.f32 %v1079_v48, %v953_v15  ;;  %v1874_v1 = vsel %vm1273_vm10, 1.0, %v2125_v0  ;;  %v1655_v2 = vadd.f32 %v1873_v49, %v1654_v51  ;;  %v840_v49 = vsub.f32 %v2285_v36, %v2232_v11 }
 0x1b6   :  { %v955_v4 = vmax.f32 %v827_v24, 0.0 }
 0x1b7   :  { %v2364_v52 = vpop.permute.xlu0 %351  ;;  %v2371_v62 = vpop.permute.xlu1 %253  ;;  %v1656_v27 = vadd.f32 %v1874_v1, %v1655_v2  ;;  %v1081_v37 = vadd.f32 %v1080_v56, %v2323_v3  ;;  %v1883_v3 = vsel %vm1282_vm12, 1.0, %v2125_v0 }
 0x1b8   :  { %v852_v57 = vsub.f32 %v2364_v52, %v2234_v13  ;;  %vm1275_vm14 = vcmp.gt.f32.partialorder %v955_v4, 0.0 }
 0x1b9   :  { %560 = vbcast.lane.b32.xlu0 %v2223_v59, 320  ;;  %528 = vbcast.lane.b32.xlu1 %v2223_v59, 256  ;;  %v1082_v56 = vadd.f32 %v1081_v37, %v955_v4 }
 0x1bb   :  { %v2384_v20 = vpop.permute.xlu0 %359  ;;  %v265_v26 = vpop.permute.xlu1 %264 }
 0x1bc   :  { %v854_v23 = vsub.f32 %v2384_v20, %v2234_v13  ;;  %v831_v29 = vsub.f32 %v265_v26, %v2232_v11 }
 0x1bd   :  { %497 = vbcast.lane.b32.xlu0 %v2221_v58, 328  ;;  %595 = vbcast.lane.b32.xlu1 %v2225_v60, 256 }
 0x1be   :  { %v959_v43 = vmax.f32 %v831_v29, 0.0 }
 0x1bf   :  { %v2402_v44 = vpop.permute.xlu0 %367  ;;  %v273_v41 = vpop.permute.xlu1 %272 }
 0x1c0   :  { %v856_v50 = vsub.f32 %v2402_v44, %v2234_v13  ;;  %v1091_v53 = vadd.f32 %v959_v43, %v2337_v25  ;;  %vm1279_vm11 = vcmp.gt.f32.partialorder %v959_v43, 0.0  ;;  %v833_v32 = vsub.f32 %v273_v41, %v2232_v11 }
 0x1c1   :  { %564 = vbcast.lane.b32.xlu0 %v2223_v59, 328  ;;  %v1880_v34 = vsel %vm1279_vm11, 1.0, %v2125_v0  ;;  %536 = vbcast.lane.b32.xlu1 %v2223_v59, 272  ;;  %v1881_v25 = vsel %vm1280_vm8, 1.0, %v2125_v0 }
 0x1c2   :  { %v1667_v5 = vadd.f32 %v1880_v34, %v1879_v30  ;;  %v1092_v8 = vadd.f32 %v1091_v53, %v960_v63  ;;  %v961_v10 = vmax.f32 %v833_v32, 0.0  ;;  %v966_v30 = vmax.f32 %v838_v47, 0.0 }
 0x1c3   :  { %v2415_v21 = vpop.permute.xlu0 %375  ;;  %v281_v26 = vpop.permute.xlu1 %280  ;;  %v829_v63 = vsub.f32 %v2371_v62, %v2230_v7  ;;  %v1877_v47 = vsel %vm1276_vm7, 1.0, %v2125_v0  ;;  %v1657_v62 = vadd.f32 %v2382_v9, %v1656_v27  ;;  %v968_v9 = vmax.f32 %v840_v49, 0.0 }
 0x1c4   :  { %v858_v15 = vsub.f32 %v2415_v21, %v2234_v13  ;;  %v1668_v29 = vadd.f32 %v1881_v25, %v1667_v5  ;;  %v1093_v33 = vadd.f32 %v1092_v8, %v961_v10  ;;  %vm1281_vm13 = vcmp.gt.f32.partialorder %v961_v10, 0.0 }
 0x1c5   :  { %501 = vbcast.lane.b32.xlu0 %v2221_v58, 336  ;;  %v1882_v24 = vsel %vm1281_vm13, 1.0, %v2125_v0  ;;  %666 = vbcast.lane.b32.xlu1 %v2227_v61, 264  ;;  %v835_v43 = vsub.f32 %v281_v26, %v2232_v11  ;;  %vm1286_vm0 = vcmp.gt.f32.partialorder %v966_v30, 0.0  ;;  %v957_v36 = vmax.f32 %v829_v63, 0.0 }
 0x1c6   :  { %v1669_v38 = vadd.f32 %v1882_v24, %v1668_v29  ;;  %v1094_v42 = vadd.f32 %v1093_v33, %v962_v31  ;;  %v1876_v31 = vsel %vm1275_vm14, 1.0, %v2125_v0  ;;  %v842_v5 = vsub.f32 %v2290_v39, %v2232_v11 }
 0x1c7   :  { %v2428_v48 = vpop.permute.xlu0 %383  ;;  %v289_v7 = vpop.permute.xlu1 %288  ;;  %v963_v53 = vmax.f32 %v835_v43, 0.0  ;;  %v1658_v4 = vadd.f32 %v1876_v31, %v1657_v62  ;;  %v1885_v29 = vsel %vm1284_vm15, 1.0, %v2125_v0  ;;  %v1083_v33 = vadd.f32 %v1082_v56, %v2358_v28 }
 0x1c8   :  { %v860_v41 = vsub.f32 %v2428_v48, %v2234_v13  ;;  %v1670_v51 = vadd.f32 %v1883_v3, %v1669_v38  ;;  %v837_v32 = vsub.f32 %v289_v7, %v2232_v11  ;;  %v1887_v24 = vsel %vm1286_vm0, 1.0, %v2125_v0 }
 0x1c9   :  { %568 = vbcast.lane.b32.xlu0 %v2223_v59, 336  ;;  %540 = vbcast.lane.b32.xlu1 %v2223_v59, 280  ;;  %v1095_v1 = vadd.f32 %v1094_v42, %v963_v53  ;;  %vm1283_vm1 = vcmp.gt.f32.partialorder %v963_v53, 0.0  ;;  %vm1277_vm3 = vcmp.gt.f32.partialorder %v957_v36, 0.0  ;;  %vm1288_vm4 = vcmp.gt.f32.partialorder %v968_v9, 0.0 }
 0x1ca   :  { %v965_v34 = vmax.f32 %v837_v32, 0.0  ;;  %v1884_v8 = vsel %vm1283_vm1, 1.0, %v2125_v0  ;;  %v970_v43 = vmax.f32 %v842_v5, 0.0  ;;  %v1659_v49 = vadd.f32 %v1877_v47, %v1658_v4 }
 0x1cb   :  { %v2445_v2 = vpop.permute.xlu0 %394  ;;  %v297_v25 = vpop.permute.xlu1 %296  ;;  %v1671_v26 = vadd.f32 %v1884_v8, %v1670_v51  ;;  %v1096_v27 = vadd.f32 %v1095_v1, %v964_v22  ;;  %v972_v53 = vmax.f32 %v844_v46, 0.0  ;;  %v1084_v32 = vadd.f32 %v1083_v33, %v957_v36 }
 0x1cc   :  { %v862_v10 = vsub.f32 %v2445_v2, %v2238_v16  ;;  %vm1285_vm2 = vcmp.gt.f32.partialorder %v965_v34, 0.0  ;;  %v839_v39 = vsub.f32 %v297_v25, %v2232_v11  ;;  %v1878_v56 = vsel %vm1277_vm3, 1.0, %v2125_v0 }
 0x1cd   :  { %505 = vbcast.lane.b32.xlu0 %v2221_v58, 344  ;;  %v1886_v37 = vsel %vm1285_vm2, 1.0, %v2125_v0  ;;  %607 = vbcast.lane.b32.xlu1 %v2225_v60, 280  ;;  %v1672_v63 = vadd.f32 %v1885_v29, %v1671_v26  ;;  %v1097_v38 = vadd.f32 %v1096_v27, %v965_v34  ;;  %v1660_v45 = vadd.f32 %v1878_v56, %v1659_v49 }
 0x1ce   :  { %v967_v22 = vmax.f32 %v839_v39, 0.0  ;;  %v1889_v36 = vsel %vm1288_vm4, 1.0, %v2125_v0  ;;  %v1085_v4 = vrot.slane %v1084_v32, 4  ;;  %vm1290_vm7 = vcmp.gt.f32.partialorder %v970_v43, 0.0 }
 0x1cf   :  { %v2461_v42 = vpop.permute.xlu0 %402  ;;  %v305_v3 = vpop.permute.xlu1 %304  ;;  %v1673_v7 = vadd.f32 %v1886_v37, %v1672_v63  ;;  %v1098_v62 = vadd.f32 %v1097_v38, %v966_v30  ;;  %vm1292_vm8 = vcmp.gt.f32.partialorder %v972_v53, 0.0  ;;  %v974_v39 = vmax.f32 %v846_v55, 0.0 }
 0x1d0   :  { %v864_v28 = vsub.f32 %v2461_v42, %v2238_v16  ;;  %v841_v51 = vsub.f32 %v305_v3, %v2232_v11  ;;  %vm1287_vm5 = vcmp.gt.f32.partialorder %v967_v22, 0.0  ;;  %v1086_v54 = vadd.f32 %v1085_v4, %v1084_v32 }
 0x1d1   :  { %572 = vbcast.lane.b32.xlu0 %v2223_v59, 344  ;;  %674 = vbcast.lane.b32.xlu1 %v2227_v61, 280  ;;  %v1674_v31 = vadd.f32 %v1887_v24, %v1673_v7  ;;  %v1099_v1 = vadd.f32 %v1098_v62, %v967_v22  ;;  %v1888_v47 = vsel %vm1287_vm5, 1.0, %v2125_v0  ;;  %v1661_v22 = vrot.slane %v1660_v45, 4 }
 0x1d2   :  { %v969_v30 = vmax.f32 %v841_v51, 0.0  ;;  %v1891_v62 = vsel %vm1290_vm7, 1.0, %v2125_v0  ;;  %vm1294_vm10 = vcmp.gt.f32.partialorder %v974_v39, 0.0  ;;  %vm1246_vm14 = vcmask 1041409  }
 0x1d3   :  { %v2474_v34 = vpop.permute.xlu0 %410  ;;  %v313_v8 = vpop.permute.xlu1 %312  ;;  %v1675_v46 = vadd.f32 %v1888_v47, %v1674_v31  ;;  %v1100_v25 = vadd.f32 %v1099_v1, %v968_v9  ;;  %v976_v9 = vmax.f32 %v848_v12, 0.0  ;;  %v1662_v32 = vadd.f32 %v1661_v22, %v1660_v45 }
 0x1d4   :  { %v866_v5 = vsub.f32 %v2474_v34, %v2238_v16  ;;  %vm1289_vm6 = vcmp.gt.f32.partialorder %v969_v30, 0.0  ;;  %v843_v27 = vsub.f32 %v313_v8, %v2232_v11  ;;  %v1087_v8 = vrot.slane %v1086_v54, 2 }
 0x1d5   :  { %509 = vbcast.lane.b32.xlu0 %v2221_v58, 352  ;;  %v1890_v26 = vsel %vm1289_vm6, 1.0, %v2125_v0  ;;  %548 = vbcast.lane.b32.xlu1 %v2223_v59, 296  ;;  %v1676_v29 = vadd.f32 %v1889_v36, %v1675_v46  ;;  %v1101_v33 = vadd.f32 %v1100_v25, %v969_v30  ;;  %vm1296_vm11 = vcmp.gt.f32.partialorder %v976_v9, 0.0 }
 0x1d6   :  { %v971_v24 = vmax.f32 %v843_v27, 0.0  ;;  %v978_v30 = vmax.f32 %v850_v40, 0.0  ;;  %v1897_v45 = vsel %vm1296_vm11, 1.0, %v2125_v0  ;;  %v1088_v22 = vadd.f32 %v1087_v8, %v1086_v54 }
 0x1d7   :  { %v2484_v37 = vpop.permute.xlu0 %418  ;;  %v321_v38 = vpop.permute.xlu1 %320  ;;  %v1677_v3 = vadd.f32 %v1890_v26, %v1676_v29  ;;  %v1102_v49 = vadd.f32 %v1101_v33, %v970_v43  ;;  %v1893_v43 = vsel %vm1292_vm8, 1.0, %v2125_v0  ;;  %v1663_v29 = vrot.slane %v1662_v32, 2 }
 0x1d8   :  { %v868_v63 = vsub.f32 %v2484_v37, %v2238_v16  ;;  %v845_v7 = vsub.f32 %v321_v38, %v2232_v11  ;;  %vm1291_vm9 = vcmp.gt.f32.partialorder %v971_v24, 0.0  ;;  %vm1298_vm13 = vcmp.gt.f32.partialorder %v978_v30, 0.0 }
 0x1d9   :  { %576 = vbcast.lane.b32.xlu0 %v2223_v59, 352  ;;  %615 = vbcast.lane.b32.xlu1 %v2225_v60, 296  ;;  %v1678_v55 = vadd.f32 %v1891_v62, %v1677_v3  ;;  %v1103_v6 = vadd.f32 %v1102_v49, %v971_v24  ;;  %v1892_v12 = vsel %vm1291_vm9, 1.0, %v2125_v0  ;;  %v1089_v8 = vrot.slane %v1088_v22, 1 }
 0x1da   :  { %v973_v51 = vmax.f32 %v845_v7, 0.0  ;;  %v1899_v52 = vsel %vm1298_vm13, 1.0, %v2125_v0  ;;  %v990_v48 = vmax.f32 %v862_v10, 0.0 }
 0x1db   :  { %v2499_v56 = vpop.permute.xlu0 %426  ;;  %v332_v31 = vpop.permute.xlu1 %331  ;;  %v1679_v1 = vadd.f32 %v1892_v12, %v1678_v55  ;;  %v1104_v47 = vadd.f32 %v1103_v6, %v972_v53  ;;  %v1895_v53 = vsel %vm1294_vm10, 1.0, %v2125_v0  ;;  %v980_v12 = vmax.f32 %v852_v57, 0.0 }
 0x1dc   :  { %v870_v11 = vsub.f32 %v2499_v56, %v2238_v16  ;;  %vm1293_vm12 = vcmp.gt.f32.partialorder %v973_v51, 0.0  ;;  %v847_v25 = vsub.f32 %v332_v31, %v2234_v13  ;;  %v1664_v31 = vadd.f32 %v1663_v29, %v1662_v32 }
 0x1dd   :  { %513 = vbcast.lane.b32.xlu0 %v2221_v58, 360  ;;  %v1894_v46 = vsel %vm1293_vm12, 1.0, %v2125_v0  ;;  %682 = vbcast.lane.b32.xlu1 %v2227_v61, 296  ;;  %v1680_v36 = vadd.f32 %v1893_v43, %v1679_v1  ;;  %v1105_v4 = vadd.f32 %v1104_v47, %v973_v51  ;;  %vm1300_vm1 = vcmp.gt.f32.partialorder %v980_v12, 0.0 }
 0x1de   :  { %v975_v27 = vmax.f32 %v847_v25, 0.0  ;;  %v1665_v29 = vrot.slane %v1664_v31, 1  ;;  %vm1310_vm12 = vcmp.gt.f32.partialorder %v990_v48, 0.0 }
 0x1df   :  { %v2512_v26 = vpop.permute.xlu0 %434  ;;  %v340_v40 = vpop.permute.xlu1 %339  ;;  %v1106_v33 = vrot.slane %v1105_v4, 4  ;;  %v1681_v24 = vadd.f32 %v1894_v46, %v1680_v36 }
 0x1e0   :  { %v872_v35 = vsub.f32 %v2512_v26, %v2238_v16  ;;  %v849_v38 = vsub.f32 %v340_v40, %v2234_v13  ;;  %v1112_v3 = vadd.f32 %v975_v27, %v974_v39  ;;  %vm1295_vm15 = vcmp.gt.f32.partialorder %v975_v27, 0.0 }
 0x1e1   :  { %580 = vbcast.lane.b32.xlu0 %v2223_v59, 360  ;;  %556 = vbcast.lane.b32.xlu1 %v2223_v59, 312  ;;  %v1107_v49 = vadd.f32 %v1106_v33, %v1105_v4  ;;  %v1682_v7 = vrot.slane %v1681_v24, 4  ;;  %v1896_v62 = vsel %vm1295_vm15, 1.0, %v2125_v0 }
 0x1e2   :  { %v977_v55 = vmax.f32 %v849_v38, 0.0  ;;  %v1688_v51 = vadd.f32 %v1896_v62, %v1895_v53  ;;  %v1113_v43 = vadd.f32 %v1112_v3, %v976_v9  ;;  %v1090_v3 = vadd.f32 %v1089_v8, %v1088_v22 }
 0x1e3   :  { %v2524_v6 = vpop.permute.xlu0 %442  ;;  %v348_v39 = vpop.permute.xlu1 %347  ;;  %v1108_v1 = vrot.slane %v1107_v49, 2  ;;  %v1683_v47 = vadd.f32 %v1682_v7, %v1681_v24 }
 0x1e4   :  { %v874_v54 = vsub.f32 %v2524_v6, %v2238_v16  ;;  %vm1297_vm0 = vcmp.gt.f32.partialorder %v977_v55, 0.0  ;;  %v1689_v46 = vadd.f32 %v1897_v45, %v1688_v51  ;;  %v1114_v25 = vadd.f32 %v1113_v43, %v977_v55 }
 0x1e5   :  { %517 = vbcast.lane.b32.xlu0 %v2221_v58, 368  ;;  %v1898_v36 = vsel %vm1297_vm0, 1.0, %v2125_v0  ;;  %623 = vbcast.lane.b32.xlu1 %v2225_v60, 312  ;;  %v1109_v57 = vadd.f32 %v1108_v1, %v1107_v49  ;;  %v1684_v9 = vrot.slane %v1683_v47, 2  ;;  %v851_v4 = vsub.f32 %v348_v39, %v2234_v13 }
 0x1e6   :  { %v1690_v53 = vadd.f32 %v1898_v36, %v1689_v46  ;;  %v1115_v27 = vadd.f32 %v1114_v25, %v978_v30  ;;  %v982_v49 = vmax.f32 %v854_v23, 0.0  ;;  %v1901_v39 = vsel %vm1300_vm1, 1.0, %v2125_v0 }
 0x1e7   :  { %v2537_v32 = vpop.permute.xlu0 %450  ;;  %v356_v40 = vpop.permute.xlu1 %355  ;;  %v1110_v33 = vrot.slane %v1109_v57, 1  ;;  %v1685_v24 = vadd.f32 %v1684_v9, %v1683_v47  ;;  %v979_v38 = vmax.f32 %v851_v4, 0.0  ;;  %v1666_v47 = vadd.f32 %v1665_v29, %v1664_v31 }
 0x1e8   :  { %v876_v45 = vsub.f32 %v2537_v32, %v2238_v16  ;;  %v1691_v7 = vadd.f32 %v1899_v52, %v1690_v53  ;;  %v853_v62 = vsub.f32 %v356_v40, %v2234_v13  ;;  %v984_v36 = vmax.f32 %v856_v50, 0.0 }
 0x1e9   :  { %584 = vbcast.lane.b32.xlu0 %v2223_v59, 368  ;;  %690 = vbcast.lane.b32.xlu1 %v2227_v61, 312  ;;  %v1111_v30 = vadd.f32 %v1110_v33, %v1109_v57  ;;  %v1686_v55 = vrot.slane %v1685_v24, 1  ;;  %v1116_v51 = vadd.f32 %v1115_v27, %v979_v38  ;;  %vm1299_vm2 = vcmp.gt.f32.partialorder %v979_v38, 0.0 }
 0x1ea   :  { %v1900_v22 = vsel %vm1299_vm2, 1.0, %v2125_v0  ;;  %v981_v1 = vmax.f32 %v853_v62, 0.0  ;;  %vm1302_vm4 = vcmp.gt.f32.partialorder %v982_v49, 0.0  ;;  %vm1304_vm5 = vcmp.gt.f32.partialorder %v984_v36, 0.0 }
 0x1eb   :  { %v2547_v43 = vpop.permute.xlu0 %461  ;;  %v364_v23 = vpop.permute.xlu1 %363  ;;  %v2555_v8 = vsel %vm1246_vm14, %v1111_v30, %v1090_v3  ;;  %v1687_v46 = vadd.f32 %v1686_v55, %v1685_v24  ;;  %v1692_v25 = vadd.f32 %v1900_v22, %v1691_v7  ;;  %v1117_v52 = vadd.f32 %v1116_v51, %v980_v12 }
 0x1ec   :  { %v878_v20 = vsub.f32 %v2547_v43, %v2236_v14  ;;  %vm1301_vm3 = vcmp.gt.f32.partialorder %v981_v1, 0.0  ;;  %v855_v57 = vsub.f32 %v364_v23, %v2234_v13  ;;  %v1903_v29 = vsel %vm1302_vm4, 1.0, %v2125_v0 }
 0x1ed   :  { %521 = vbcast.lane.b32.xlu0 %v2221_v58, 376  ;;  %627 = vbcast.lane.b32.xlu1 %v2225_v60, 320  ;;  %v2564_v31 = vsel %vm1246_vm14, %v1687_v46, %v1666_v47  ;;  %v1693_v9 = vadd.f32 %v1901_v39, %v1692_v25  ;;  %v1902_v4 = vsel %vm1301_vm3, 1.0, %v2125_v0  ;;  %v1118_v58 = vadd.f32 %v1117_v52, %v981_v1 }
 0x1ee   :  { %v983_v27 = vmax.f32 %v855_v57, 0.0  ;;  %v986_v24 = vmax.f32 %v858_v15, 0.0  ;;  %v1905_v21 = vsel %vm1304_vm5, 1.0, %v2125_v0  ;;  %v988_v22 = vmax.f32 %v860_v41, 0.0 }
 0x1ef   :  { %v2567_v53 = vpop.permute.xlu0 %469  ;;  %v372_v50 = vpop.permute.xlu1 %371  ;;  %v1694_v12 = vadd.f32 %v1902_v4, %v1693_v9  ;;  %v1119_v33 = vadd.f32 %v1118_v58, %v982_v49  ;;  %v992_v58 = vmax.f32 %v864_v28, 0.0  ;;  %v994_v28 = vmax.f32 %v866_v5, 0.0 }
 0x1f0   :  { %v880_v44 = vsub.f32 %v2567_v53, %v2236_v14  ;;  %v857_v40 = vsub.f32 %v372_v50, %v2234_v13  ;;  %vm1303_vm6 = vcmp.gt.f32.partialorder %v983_v27, 0.0  ;;  %vm1306_vm8 = vcmp.gt.f32.partialorder %v986_v24, 0.0 }
 0x1f1   :  { %588 = vbcast.lane.b32.xlu0 %v2223_v59, 376  ;;  %694 = vbcast.lane.b32.xlu1 %v2227_v61, 320  ;;  %v1695_v38 = vadd.f32 %v1903_v29, %v1694_v12  ;;  %v1904_v3 = vsel %vm1303_vm6, 1.0, %v2125_v0  ;;  %v1120_v30 = vadd.f32 %v1119_v33, %v983_v27  ;;  %v1907_v9 = vsel %vm1306_vm8, 1.0, %v2125_v0 }
 0x1f2   :  { %v985_v7 = vmax.f32 %v857_v40, 0.0  ;;  %vm1308_vm10 = vcmp.gt.f32.partialorder %v988_v22, 0.0  ;;  %vm1312_vm13 = vcmp.gt.f32.partialorder %v992_v58, 0.0  ;;  %vm1314_vm15 = vcmp.gt.f32.partialorder %v994_v28, 0.0 }
 0x1f3   :  { %v2579_v62 = vpop.permute.xlu0 %477  ;;  %v380_v55 = vpop.permute.xlu1 %379  ;;  %v1696_v51 = vadd.f32 %v1904_v3, %v1695_v38  ;;  %v1121_v15 = vadd.f32 %v1120_v30, %v984_v36  ;;  %v1909_v33 = vsel %vm1308_vm10, 1.0, %v2125_v0  ;;  %vm1248_vm3 = vcmask 1042434  }
 0x1f4   :  { %v882_v59 = vsub.f32 %v2579_v62, %v2236_v14  ;;  %vm1305_vm7 = vcmp.gt.f32.partialorder %v985_v7, 0.0  ;;  %v859_v49 = vsub.f32 %v380_v55, %v2234_v13  ;;  %v1006_v32 = vmax.f32 %v878_v20, 0.0 }
 0x1f5   :  { %655 = vbcast.lane.b32.xlu0 %v2225_v60, 376  ;;  %v1906_v39 = vsel %vm1305_vm7, 1.0, %v2125_v0  ;;  %631 = vbcast.lane.b32.xlu1 %v2225_v60, 328  ;;  %v1697_v1 = vadd.f32 %v1905_v21, %v1696_v51  ;;  %v1122_v46 = vadd.f32 %v1121_v15, %v985_v7 }
 0x1f6   :  { %v987_v23 = vmax.f32 %v859_v49, 0.0  ;;  %v1911_v49 = vsel %vm1310_vm12, 1.0, %v2125_v0  ;;  %vm1326_vm12 = vcmp.gt.f32.partialorder %v1006_v32, 0.0 }
 0x1f7   :  { %v2592_v47 = vpop.permute.xlu0 %485  ;;  %v388_v52 = vpop.permute.xlu1 %387  ;;  %v1698_v57 = vadd.f32 %v1906_v39, %v1697_v1  ;;  %v1123_v41 = vadd.f32 %v1122_v46, %v986_v24  ;;  %v1913_v39 = vsel %vm1312_vm13, 1.0, %v2125_v0 }
 0x1f8   :  { %v884_v25 = vsub.f32 %v2592_v47, %v2236_v14  ;;  %vm1307_vm9 = vcmp.gt.f32.partialorder %v987_v23, 0.0  ;;  %v861_v36 = vsub.f32 %v388_v52, %v2234_v13 }
 0x1f9   :  { %v1908_v4 = vsel %vm1307_vm9, 1.0, %v2125_v0  ;;  %698 = vbcast.lane.b32.xlu1 %v2227_v61, 328  ;;  %v1699_v27 = vadd.f32 %v1907_v9, %v1698_v57  ;;  %v1124_v13 = vadd.f32 %v1123_v41, %v987_v23  ;;  %v996_v57 = vmax.f32 %v868_v63, 0.0 }
 0x1fa   :  { %v989_v50 = vmax.f32 %v861_v36, 0.0 }
 0x1fb   :  { %v2606_v12 = vpop.permute.xlu0 %493  ;;  %v399_v2 = vpop.permute.xlu1 %398  ;;  %v1700_v10 = vadd.f32 %v1908_v4, %v1699_v27  ;;  %v1125_v24 = vadd.f32 %v1124_v13, %v988_v22  ;;  %vm1316_vm1 = vcmp.gt.f32.partialorder %v996_v57, 0.0 }
 0x1fc   :  { %v886_v40 = vsub.f32 %v2606_v12, %v2236_v14  ;;  %vm1309_vm11 = vcmp.gt.f32.partialorder %v989_v50, 0.0  ;;  %v863_v29 = vsub.f32 %v399_v2, %v2238_v16 }
 0x1fd   :  { %v1910_v42 = vsel %vm1309_vm11, 1.0, %v2125_v0  ;;  %635 = vbcast.lane.b32.xlu1 %v2225_v60, 336  ;;  %v1701_v38 = vadd.f32 %v1909_v33, %v1700_v10  ;;  %v1126_v30 = vadd.f32 %v1125_v24, %v989_v50 }
 0x1fe   :  { %v991_v3 = vmax.f32 %v863_v29, 0.0 }
 0x1ff   :  { %v2617_v7 = vpop.permute.xlu0 %532  ;;  %v407_v51 = vpop.permute.xlu1 %406  ;;  %v1702_v21 = vadd.f32 %v1910_v42, %v1701_v38  ;;  %v1127_v22 = vrot.slane %v1126_v30, 4 }
 0x200   :  { %v895_v55 = vsub.f32 %v2617_v7, %v2240_v17  ;;  %v1133_v15 = vadd.f32 %v991_v3, %v990_v48  ;;  %vm1311_vm14 = vcmp.gt.f32.partialorder %v991_v3, 0.0  ;;  %v865_v5 = vsub.f32 %v407_v51, %v2238_v16 }
 0x201   :  { %v1912_v34 = vsel %vm1311_vm14, 1.0, %v2125_v0  ;;  %702 = vbcast.lane.b32.xlu1 %v2227_v61, 336  ;;  %v1703_v1 = vrot.slane %v1702_v21, 4  ;;  %v1128_v36 = vadd.f32 %v1127_v22, %v1126_v30  ;;  %v998_v3 = vmax.f32 %v870_v11, 0.0 }
 0x202   :  { %v1709_v23 = vadd.f32 %v1912_v34, %v1911_v49  ;;  %v1134_v46 = vadd.f32 %v1133_v15, %v992_v58  ;;  %v993_v9 = vmax.f32 %v865_v5, 0.0  ;;  %v1915_v58 = vsel %vm1314_vm15, 1.0, %v2125_v0 }
 0x203   :  { %v2626_v52 = vpop.permute.xlu0 %599  ;;  %v415_v41 = vpop.permute.xlu1 %414  ;;  %v1704_v4 = vadd.f32 %v1703_v1, %v1702_v21  ;;  %v1129_v13 = vrot.slane %v1128_v36, 2  ;;  %vm1318_vm4 = vcmp.gt.f32.partialorder %v998_v3, 0.0  ;;  %v1023_v12 = vmax.f32 %v895_v55, 0.0 }
 0x204   :  { %v911_v48 = vsub.f32 %v2626_v52, %v2242_v18  ;;  %v1710_v27 = vadd.f32 %v1913_v39, %v1709_v23  ;;  %v867_v50 = vsub.f32 %v415_v41, %v2238_v16  ;;  %v1135_v2 = vadd.f32 %v1134_v46, %v993_v9 }
 0x205   :  { %vm1313_vm0 = vcmp.gt.f32.partialorder %v993_v9, 0.0  ;;  %639 = vbcast.lane.b32.xlu1 %v2225_v60, 344  ;;  %v1705_v37 = vrot.slane %v1704_v4, 2  ;;  %v1130_v33 = vadd.f32 %v1129_v13, %v1128_v36  ;;  %v1917_v46 = vsel %vm1316_vm1, 1.0, %v2125_v0 }
 0x206   :  { %v1914_v63 = vsel %vm1313_vm0, 1.0, %v2125_v0  ;;  %v995_v10 = vmax.f32 %v867_v50, 0.0  ;;  %v1136_v42 = vadd.f32 %v1135_v2, %v994_v28  ;;  %v1039_v7 = vmax.f32 %v911_v48, 0.0 }
 0x207   :  { %v2638_v29 = vpop.permute.xlu0 %662  ;;  %v1711_v24 = vadd.f32 %v1914_v63, %v1710_v27  ;;  %v423_v38 = vpop.permute.xlu1 %422  ;;  %v1706_v30 = vadd.f32 %v1705_v37, %v1704_v4  ;;  %v1131_v49 = vrot.slane %v1130_v33, 1  ;;  %v1000_v4 = vmax.f32 %v872_v35, 0.0 }
 0x208   :  { %vm1315_vm2 = vcmp.gt.f32.partialorder %v995_v10, 0.0  ;;  %v926_v51 = vsub.f32 %v2638_v29, %v2244_v19  ;;  %v1137_v15 = vadd.f32 %v1136_v42, %v995_v10  ;;  %v869_v28 = vsub.f32 %v423_v38, %v2238_v16 }
 0x209   :  { %v1712_v21 = vadd.f32 %v1915_v58, %v1711_v24  ;;  %v1916_v39 = vsel %vm1315_vm2, 1.0, %v2125_v0  ;;  %706 = vbcast.lane.b32.xlu1 %v2227_v61, 344  ;;  %v1707_v22 = vrot.slane %v1706_v30, 1  ;;  %v1132_v56 = vadd.f32 %v1131_v49, %v1130_v33 }
 0x20a   :  { %v1138_v5 = vadd.f32 %v1137_v15, %v996_v57  ;;  %v997_v9 = vmax.f32 %v869_v28, 0.0  ;;  %v1002_v10 = vmax.f32 %v874_v54, 0.0  ;;  %vm1320_vm7 = vcmp.gt.f32.partialorder %v1000_v4, 0.0 }
 0x20b   :  { %v2648_v34 = vpop.permute.xlu0 %603  ;;  %v1713_v11 = vadd.f32 %v1916_v39, %v1712_v21  ;;  %v431_v23 = vpop.permute.xlu1 %430  ;;  %v1708_v36 = vadd.f32 %v1707_v22, %v1706_v30  ;;  %v2660_v27 = vsel %vm1248_vm3, %v1132_v56, %v2555_v8  ;;  %v1919_v8 = vsel %vm1318_vm4, 1.0, %v2125_v0 }
 0x20c   :  { %v912_v1 = vsub.f32 %v2648_v34, %v2242_v18  ;;  %v871_v41 = vsub.f32 %v431_v23, %v2238_v16  ;;  %v1139_v13 = vadd.f32 %v1138_v5, %v997_v9  ;;  %vm1317_vm5 = vcmp.gt.f32.partialorder %v997_v9, 0.0 }
 0x20d   :  { %v1714_v50 = vadd.f32 %v1917_v46, %v1713_v11  ;;  %643 = vbcast.lane.b32.xlu1 %v2225_v60, 352  ;;  %v2667_v58 = vsel %vm1248_vm3, %v1708_v36, %v2564_v31  ;;  %v1918_v37 = vsel %vm1317_vm5, 1.0, %v2125_v0  ;;  %v1921_v6 = vsel %vm1320_vm7, 1.0, %v2125_v0 }
 0x20e   :  { %v999_v57 = vmax.f32 %v871_v41, 0.0  ;;  %v1140_v63 = vadd.f32 %v1139_v13, %v998_v3  ;;  %vm1322_vm8 = vcmp.gt.f32.partialorder %v1002_v10, 0.0  ;;  %v1004_v54 = vmax.f32 %v876_v45, 0.0 }
 0x20f   :  { %v2663_v2 = vpop.permute.xlu0 %670  ;;  %v439_v26 = vpop.permute.xlu1 %438  ;;  %v1715_v35 = vadd.f32 %v1918_v37, %v1714_v50  ;;  %v1923_v36 = vsel %vm1322_vm8, 1.0, %v2125_v0  ;;  %v1008_v13 = vmax.f32 %v880_v44, 0.0  ;;  %v1010_v44 = vmax.f32 %v882_v59, 0.0 }
 0x210   :  { %vm1319_vm6 = vcmp.gt.f32.partialorder %v999_v57, 0.0  ;;  %v873_v24 = vsub.f32 %v439_v26, %v2238_v16  ;;  %v1141_v42 = vadd.f32 %v1140_v63, %v999_v57  ;;  %vm1324_vm11 = vcmp.gt.f32.partialorder %v1004_v54, 0.0 }
 0x211   :  { %v1920_v33 = vsel %vm1319_vm6, 1.0, %v2125_v0  ;;  %710 = vbcast.lane.b32.xlu1 %v2227_v61, 352  ;;  %v1716_v31 = vadd.f32 %v1919_v8, %v1715_v35  ;;  %v1925_v35 = vsel %vm1324_vm11, 1.0, %v2125_v0  ;;  %vm1328_vm14 = vcmp.gt.f32.partialorder %v1008_v13, 0.0 }
 0x212   :  { %v1001_v30 = vmax.f32 %v873_v24, 0.0  ;;  %v1142_v21 = vadd.f32 %v1141_v42, %v1000_v4  ;;  %v1929_v62 = vsel %vm1328_vm14, 1.0, %v2125_v0  ;;  %v1012_v59 = vmax.f32 %v884_v25, 0.0 }
 0x213   :  { %v2677_v38 = vpop.permute.xlu0 %544  ;;  %v447_v3 = vpop.permute.xlu1 %446  ;;  %v1717_v49 = vadd.f32 %v1920_v33, %v1716_v31  ;;  %vm1330_vm0 = vcmp.gt.f32.partialorder %v1010_v44, 0.0  ;;  %vm1250_vm4 = vcmask 1043459   ;;  %vm1343_vm6 = vcmp.gt.f32.partialorder %v1023_v12, 0.0 }
 0x214   :  { %v875_v15 = vsub.f32 %v447_v3, %v2238_v16  ;;  %vm1321_vm9 = vcmp.gt.f32.partialorder %v1001_v30, 0.0  ;;  %v1143_v22 = vadd.f32 %v1142_v21, %v1001_v30  ;;  %v1927_v30 = vsel %vm1326_vm12, 1.0, %v2125_v0 }
 0x215   :  { %647 = vbcast.lane.b32.xlu1 %v2225_v60, 360  ;;  %v1718_v39 = vadd.f32 %v1921_v6, %v1717_v49  ;;  %v1922_v28 = vsel %vm1321_vm9, 1.0, %v2125_v0  ;;  %vm1332_vm2 = vcmp.gt.f32.partialorder %v1012_v59, 0.0  ;;  %vm1359_vm8 = vcmp.gt.f32.partialorder %v1039_v7, 0.0 }
 0x216   :  { %v1003_v56 = vmax.f32 %v875_v15, 0.0  ;;  %v1144_v46 = vadd.f32 %v1143_v22, %v1002_v10  ;;  %v898_v34 = vsub.f32 %v2677_v38, %v2240_v17 }
 0x217   :  { %v2686_v11 = vpop.permute.xlu0 %611  ;;  %v455_v5 = vpop.permute.xlu1 %454  ;;  %v1719_v23 = vadd.f32 %v1922_v28, %v1718_v39 }
 0x218   :  { %vm1323_vm10 = vcmp.gt.f32.partialorder %v1003_v56, 0.0  ;;  %v877_v9 = vsub.f32 %v455_v5, %v2238_v16  ;;  %v1145_v4 = vadd.f32 %v1144_v46, %v1003_v56 }
 0x219   :  { %v1924_v45 = vsel %vm1323_vm10, 1.0, %v2125_v0  ;;  %714 = vbcast.lane.b32.xlu1 %v2227_v61, 360  ;;  %v1720_v41 = vadd.f32 %v1923_v36, %v1719_v23  ;;  %v1014_v23 = vmax.f32 %v886_v40, 0.0 }
 0x21a   :  { %v1005_v57 = vmax.f32 %v877_v9, 0.0  ;;  %v1146_v43 = vadd.f32 %v1145_v4, %v1004_v54 }
 0x21b   :  { %v2695_v50 = vpop.permute.xlu0 %678  ;;  %v466_v37 = vpop.permute.xlu1 %465  ;;  %v1721_v26 = vadd.f32 %v1924_v45, %v1720_v41  ;;  %v1931_v41 = vsel %vm1330_vm0, 1.0, %v2125_v0  ;;  %vm1334_vm5 = vcmp.gt.f32.partialorder %v1014_v23, 0.0 }
 0x21c   :  { %v879_v20 = vsub.f32 %v466_v37, %v2236_v14  ;;  %vm1325_vm13 = vcmp.gt.f32.partialorder %v1005_v57, 0.0  ;;  %v1147_v63 = vadd.f32 %v1146_v43, %v1005_v57 }
 0x21d   :  { %651 = vbcast.lane.b32.xlu1 %v2225_v60, 368  ;;  %v1722_v16 = vadd.f32 %v1925_v35, %v1721_v26  ;;  %v1926_v8 = vsel %vm1325_vm13, 1.0, %v2125_v0 }
 0x21e   :  { %v1007_v10 = vmax.f32 %v879_v20, 0.0  ;;  %v1148_v24 = vrot.slane %v1147_v63, 4 }
 0x21f   :  { %v2704_v33 = vpop.permute.xlu0 %552  ;;  %v474_v53 = vpop.permute.xlu1 %473  ;;  %v1723_v31 = vadd.f32 %v1926_v8, %v1722_v16  ;;  %v1933_v8 = vsel %vm1332_vm2, 1.0, %v2125_v0 }
 0x220   :  { %v1154_v42 = vadd.f32 %v1007_v10, %v1006_v32  ;;  %vm1327_vm15 = vcmp.gt.f32.partialorder %v1007_v10, 0.0  ;;  %v881_v60 = vsub.f32 %v474_v53, %v2236_v14  ;;  %v1149_v3 = vadd.f32 %v1148_v24, %v1147_v63 }
 0x221   :  { %718 = vbcast.lane.b32.xlu1 %v2227_v61, 368  ;;  %v1724_v49 = vrot.slane %v1723_v31, 4  ;;  %v1928_v21 = vsel %vm1327_vm15, 1.0, %v2125_v0 }
 0x222   :  { %v1155_v15 = vadd.f32 %v1154_v42, %v1008_v13  ;;  %v1730_v54 = vadd.f32 %v1928_v21, %v1927_v30  ;;  %v1009_v39 = vmax.f32 %v881_v60, 0.0  ;;  %v1150_v28 = vrot.slane %v1149_v3, 2 }
 0x223   :  { %v2713_v6 = vpop.permute.xlu0 %619  ;;  %v482_v22 = vpop.permute.xlu1 %481  ;;  %v1725_v56 = vadd.f32 %v1724_v49, %v1723_v31  ;;  %v1935_v42 = vsel %vm1334_vm5, 1.0, %v2125_v0  ;;  %v2745_v30 = vmax.f32 %v926_v51, 0.0 }
 0x224   :  { %v883_v5 = vsub.f32 %v482_v22, %v2236_v14  ;;  %v1731_v46 = vadd.f32 %v1929_v62, %v1730_v54  ;;  %v1156_v36 = vadd.f32 %v1155_v15, %v1009_v39  ;;  %vm1329_vm1 = vcmp.gt.f32.partialorder %v1009_v39, 0.0 }
 0x225   :  { %722 = vbcast.lane.b32.xlu1 %v2227_v61, 376  ;;  %v1151_v32 = vadd.f32 %v1150_v28, %v1149_v3  ;;  %v1726_v47 = vrot.slane %v1725_v56, 2  ;;  %v1930_v25 = vsel %vm1329_vm1, 1.0, %v2125_v0  ;;  %v1944_v15 = vsel %vm1343_vm6, 1.0, %v2125_v0 }
 0x226   :  { %v1011_v45 = vmax.f32 %v883_v5, 0.0  ;;  %v1732_v4 = vadd.f32 %v1930_v25, %v1731_v46  ;;  %v1157_v13 = vadd.f32 %v1156_v36, %v1010_v44  ;;  %vm1374_vm10 = vcmp.gt.f32.partialorder %v2745_v30, 0.0 }
 0x227   :  { %v2725_v9 = vpop.permute.xlu0 %686  ;;  %v490_v57 = vpop.permute.xlu1 %489  ;;  %v1152_v40 = vrot.slane %v1151_v32, 1  ;;  %v1727_v37 = vadd.f32 %v1726_v47, %v1725_v56  ;;  %v928_v56 = vsub.f32 %v2663_v2, %v2244_v19  ;;  %v914_v2 = vsub.f32 %v2686_v11, %v2242_v18 }
 0x228   :  { %vm1331_vm3 = vcmp.gt.f32.partialorder %v1011_v45, 0.0  ;;  %v1733_v61 = vadd.f32 %v1931_v41, %v1732_v4  ;;  %v1158_v26 = vadd.f32 %v1157_v13, %v1011_v45  ;;  %v885_v16 = vsub.f32 %v490_v57, %v2236_v14 }
 0x229   :  { %v1932_v43 = vsel %vm1331_vm3, 1.0, %v2125_v0  ;;  %v1153_v20 = vadd.f32 %v1152_v40, %v1151_v32  ;;  %v1728_v35 = vrot.slane %v1727_v37, 1  ;;  %v1975_v38 = vsel %vm1374_vm10, 1.0, %v2125_v0 }
 0x22a   :  { %v1734_v55 = vadd.f32 %v1932_v43, %v1733_v61  ;;  %v1159_v10 = vadd.f32 %v1158_v26, %v1012_v59  ;;  %v1013_v24 = vmax.f32 %v885_v16, 0.0  ;;  %v1056_v13 = vmax.f32 %v928_v56, 0.0 }
 0x22b   :  { %v2733_v63 = vpop.permute.xlu0 %560  ;;  %v529_v53 = vpop.permute.xlu1 %528  ;;  %v1729_v44 = vadd.f32 %v1728_v35, %v1727_v37  ;;  %v2749_v52 = vsel %vm1250_vm4, %v1153_v20, %v2660_v27  ;;  %v1040_v27 = vmax.f32 %v912_v1, 0.0  ;;  %v1026_v37 = vmax.f32 %v898_v34, 0.0 }
 0x22c   :  { %v894_v31 = vsub.f32 %v529_v53, %v2240_v17  ;;  %v1735_v60 = vadd.f32 %v1933_v8, %v1734_v55  ;;  %v1160_v48 = vadd.f32 %v1159_v10, %v1013_v24  ;;  %vm1333_vm7 = vcmp.gt.f32.partialorder %v1013_v24, 0.0 }
 0x22d   :  { %v2753_v21 = vsel %vm1250_vm4, %v1729_v44, %v2667_v58  ;;  %v1934_v29 = vsel %vm1333_vm7, 1.0, %v2125_v0  ;;  %vm1360_vm12 = vcmp.gt.f32.partialorder %v1040_v27, 0.0  ;;  %v1042_v8 = vmax.f32 %v914_v2, 0.0 }
 0x22e   :  { %v1022_v3 = vmax.f32 %v894_v31, 0.0  ;;  %v1736_v59 = vadd.f32 %v1934_v29, %v1735_v60  ;;  %v1161_v58 = vadd.f32 %v1160_v48, %v1014_v23  ;;  %v1960_v23 = vsel %vm1359_vm8, 1.0, %v2125_v0 }
 0x22f   :  { %v498_v49 = vpop.permute.xlu0 %497  ;;  %v596_v62 = vpop.permute.xlu1 %595  ;;  %v1961_v11 = vsel %vm1360_vm12, 1.0, %v2125_v0  ;;  %vm1376_vm15 = vcmp.gt.f32.partialorder %v1056_v13, 0.0  ;;  %v930_v53 = vsub.f32 %v2695_v50, %v2244_v19  ;;  %vm1346_vm0 = vcmp.gt.f32.partialorder %v1026_v37, 0.0 }
 0x230   :  { %v887_v51 = vsub.f32 %v498_v49, %v2236_v14  ;;  %v1175_v54 = vadd.f32 %v1023_v12, %v1022_v3  ;;  %vm1342_vm9 = vcmp.gt.f32.partialorder %v1022_v3, 0.0  ;;  %v910_v28 = vsub.f32 %v596_v62, %v2242_v18 }
 0x231   :  { %v1943_v39 = vsel %vm1342_vm9, 1.0, %v2125_v0  ;;  %v1737_v46 = vadd.f32 %v1935_v42, %v1736_v59  ;;  %v900_v42 = vsub.f32 %v2704_v33, %v2240_v17  ;;  %v1977_v50 = vsel %vm1376_vm15, 1.0, %v2125_v0 }
 0x232   :  { %v1015_v22 = vmax.f32 %v887_v51, 0.0  ;;  %v1751_v5 = vadd.f32 %v1944_v15, %v1943_v39  ;;  %v1038_v32 = vmax.f32 %v910_v28, 0.0  ;;  %vm1362_vm3 = vcmp.gt.f32.partialorder %v1042_v8, 0.0 }
 0x233   :  { %v2766_v36 = vpop.permute.xlu0 %564  ;;  %v537_v47 = vpop.permute.xlu1 %536  ;;  %v1058_v62 = vmax.f32 %v930_v53, 0.0  ;;  %v1947_v39 = vsel %vm1346_vm0, 1.0, %v2125_v0  ;;  %v1963_v56 = vsel %vm1362_vm3, 1.0, %v2125_v0  ;;  %v932_v34 = vsub.f32 %v2725_v9, %v2244_v19 }
 0x234   :  { %v1162_v1 = vadd.f32 %v1161_v58, %v1015_v22  ;;  %vm1335_vm11 = vcmp.gt.f32.partialorder %v1015_v22, 0.0  ;;  %v896_v45 = vsub.f32 %v537_v47, %v2240_v17  ;;  %v1196_v4 = vadd.f32 %v1039_v7, %v1038_v32 }
 0x235   :  { %v1936_v25 = vsel %vm1335_vm11, 1.0, %v2125_v0  ;;  %vm1358_vm13 = vcmp.gt.f32.partialorder %v1038_v32, 0.0  ;;  %v2798_v22 = vmax.f32 %v900_v42, 0.0  ;;  %vm1378_vm5 = vcmp.gt.f32.partialorder %v1058_v62, 0.0 }
 0x236   :  { %v1738_v41 = vadd.f32 %v1936_v25, %v1737_v46  ;;  %v1959_v57 = vsel %vm1358_vm13, 1.0, %v2125_v0  ;;  %v1024_v12 = vmax.f32 %v896_v45, 0.0  ;;  %v1197_v20 = vadd.f32 %v1196_v4, %v1040_v27 }
 0x237   :  { %v502_v40 = vpop.permute.xlu0 %501  ;;  %v1772_v61 = vadd.f32 %v1960_v23, %v1959_v57  ;;  %v667_v43 = vpop.permute.xlu1 %666  ;;  %vm1348_vm6 = vcmp.gt.f32.partialorder %v2798_v22, 0.0  ;;  %v2815_v57 = vmax.f32 %v932_v34, 0.0 }
 0x238   :  { %v888_v26 = vsub.f32 %v502_v40, %v2236_v14  ;;  %v1176_v35 = vadd.f32 %v1175_v54, %v1024_v12  ;;  %vm1344_vm14 = vcmp.gt.f32.partialorder %v1024_v12, 0.0  ;;  %v927_v16 = vsub.f32 %v667_v43, %v2244_v19 }
 0x239   :  { %v1945_v7 = vsel %vm1344_vm14, 1.0, %v2125_v0  ;;  %v1773_v10 = vadd.f32 %v1961_v11, %v1772_v61  ;;  %vm1380_vm11 = vcmp.gt.f32.partialorder %v2815_v57, 0.0 }
 0x23a   :  { %v1016_v55 = vmax.f32 %v888_v26, 0.0  ;;  %v1752_v44 = vadd.f32 %v1945_v7, %v1751_v5  ;;  %v1055_v24 = vmax.f32 %v927_v16, 0.0  ;;  %v1979_v16 = vsel %vm1378_vm5, 1.0, %v2125_v0 }
 0x23b   :  { %v2787_v31 = vpop.permute.xlu0 %568  ;;  %v541_v48 = vpop.permute.xlu1 %540  ;;  %v903_v7 = vsub.f32 %v2766_v36, %v2240_v17 }
 0x23c   :  { %v1163_v60 = vadd.f32 %v1162_v1, %v1016_v55  ;;  %vm1336_vm1 = vcmp.gt.f32.partialorder %v1016_v55, 0.0  ;;  %v1217_v49 = vadd.f32 %v1055_v24, %v2745_v30  ;;  %vm1375_vm2 = vcmp.gt.f32.partialorder %v1055_v24, 0.0 }
 0x23d   :  { %v1937_v3 = vsel %vm1336_vm1, 1.0, %v2125_v0  ;;  %v897_v15 = vsub.f32 %v541_v48, %v2240_v17  ;;  %v1976_v51 = vsel %vm1375_vm2, 1.0, %v2125_v0  ;;  %v916_v30 = vsub.f32 %v2713_v6, %v2242_v18 }
 0x23e   :  { %v1739_v29 = vadd.f32 %v1937_v3, %v1738_v41  ;;  %v1793_v27 = vadd.f32 %v1976_v51, %v1975_v38  ;;  %v1218_v54 = vadd.f32 %v1217_v49, %v1056_v13  ;;  %v2834_v49 = vmax.f32 %v903_v7, 0.0 }
 0x23f   :  { %v1025_v59 = vmax.f32 %v897_v15, 0.0  ;;  %v506_v33 = vpop.permute.xlu0 %505  ;;  %v608_v28 = vpop.permute.xlu1 %607  ;;  %v2811_v2 = vmax.f32 %v916_v30, 0.0  ;;  %v904_v15 = vsub.f32 %v2787_v31, %v2240_v17 }
 0x240   :  { %v889_v58 = vsub.f32 %v506_v33, %v2236_v14  ;;  %v913_v46 = vsub.f32 %v608_v28, %v2242_v18  ;;  %v1794_v47 = vadd.f32 %v1977_v50, %v1793_v27  ;;  %vm1351_vm15 = vcmp.gt.f32.partialorder %v2834_v49, 0.0 }
 0x241   :  { %v1177_v5 = vadd.f32 %v1176_v35, %v1025_v59  ;;  %vm1345_vm4 = vcmp.gt.f32.partialorder %v1025_v59, 0.0  ;;  %vm1364_vm9 = vcmp.gt.f32.partialorder %v2811_v2, 0.0 }
 0x242   :  { %v1946_v1 = vsel %vm1345_vm4, 1.0, %v2125_v0  ;;  %v1017_v32 = vmax.f32 %v889_v58, 0.0  ;;  %v1041_v25 = vmax.f32 %v913_v46, 0.0  ;;  %v1965_v31 = vsel %vm1364_vm9, 1.0, %v2125_v0 }
 0x243   :  { %v1753_v23 = vadd.f32 %v1946_v1, %v1752_v44  ;;  %v2808_v6 = vpop.permute.xlu0 %572  ;;  %v1178_v45 = vadd.f32 %v1177_v5, %v1026_v37  ;;  %v675_v4 = vpop.permute.xlu1 %674  ;;  %v902_v37 = vsub.f32 %v2733_v63, %v2240_v17  ;;  %v1981_v5 = vsel %vm1380_vm11, 1.0, %v2125_v0 }
 0x244   :  { %v1164_v41 = vadd.f32 %v1163_v60, %v1017_v32  ;;  %vm1337_vm7 = vcmp.gt.f32.partialorder %v1017_v32, 0.0  ;;  %v1198_v9 = vadd.f32 %v1197_v20, %v1041_v25  ;;  %vm1361_vm8 = vcmp.gt.f32.partialorder %v1041_v25, 0.0 }
 0x245   :  { %v1938_v38 = vsel %vm1337_vm7, 1.0, %v2125_v0  ;;  %v929_v13 = vsub.f32 %v675_v4, %v2244_v19  ;;  %v1962_v40 = vsel %vm1361_vm8, 1.0, %v2125_v0  ;;  %v1754_v61 = vadd.f32 %v1947_v39, %v1753_v23 }
 0x246   :  { %v1740_v12 = vadd.f32 %v1938_v38, %v1739_v29  ;;  %v1774_v26 = vadd.f32 %v1962_v40, %v1773_v10  ;;  %v1199_v35 = vadd.f32 %v1198_v9, %v1042_v8  ;;  %v1949_v20 = vsel %vm1348_vm6, 1.0, %v2125_v0 }
 0x247   :  { %v1057_v43 = vmax.f32 %v929_v13, 0.0  ;;  %v510_v11 = vpop.permute.xlu0 %509  ;;  %v549_v53 = vpop.permute.xlu1 %548  ;;  %v2832_v42 = vmax.f32 %v902_v37, 0.0  ;;  %v905_v33 = vsub.f32 %v2808_v6, %v2240_v17  ;;  %v2851_v46 = vmax.f32 %v904_v15, 0.0 }
 0x248   :  { %v890_v55 = vsub.f32 %v510_v11, %v2236_v14  ;;  %v899_v10 = vsub.f32 %v549_v53, %v2240_v17  ;;  %v1775_v24 = vadd.f32 %v1963_v56, %v1774_v26 }
 0x249   :  { %v1219_v63 = vadd.f32 %v1218_v54, %v1057_v43  ;;  %vm1377_vm10 = vcmp.gt.f32.partialorder %v1057_v43, 0.0  ;;  %vm1350_vm14 = vcmp.gt.f32.partialorder %v2832_v42, 0.0  ;;  %v2856_v23 = vmax.f32 %v905_v33, 0.0 }
 0x24a   :  { %v1978_v8 = vsel %vm1377_vm10, 1.0, %v2125_v0  ;;  %v1018_v44 = vmax.f32 %v890_v55, 0.0  ;;  %v1027_v48 = vmax.f32 %v899_v10, 0.0  ;;  %vm1352_vm1 = vcmp.gt.f32.partialorder %v2851_v46, 0.0 }
 0x24b   :  { %v1795_v60 = vadd.f32 %v1978_v8, %v1794_v47  ;;  %v577_v36 = vpop.permute.xlu0 %576  ;;  %v1220_v3 = vadd.f32 %v1219_v63, %v1058_v62  ;;  %v616_v29 = vpop.permute.xlu1 %615  ;;  %vm1353_vm4 = vcmp.gt.f32.partialorder %v2856_v23, 0.0  ;;  %v1951_v53 = vsel %vm1350_vm14, 1.0, %v2125_v0 }
 0x24c   :  { %v1165_v50 = vadd.f32 %v1164_v41, %v1018_v44  ;;  %vm1338_vm12 = vcmp.gt.f32.partialorder %v1018_v44, 0.0  ;;  %v1179_v27 = vadd.f32 %v1178_v45, %v1027_v48  ;;  %vm1347_vm13 = vcmp.gt.f32.partialorder %v1027_v48, 0.0 }
 0x24d   :  { %v1939_v51 = vsel %vm1338_vm12, 1.0, %v2125_v0  ;;  %v915_v59 = vsub.f32 %v616_v29, %v2242_v18  ;;  %v1948_v62 = vsel %vm1347_vm13, 1.0, %v2125_v0  ;;  %v1796_v39 = vadd.f32 %v1979_v16, %v1795_v60 }
 0x24e   :  { %v1741_v54 = vadd.f32 %v1939_v51, %v1740_v12  ;;  %v1755_v30 = vadd.f32 %v1948_v62, %v1754_v61  ;;  %v1180_v56 = vadd.f32 %v1179_v27, %v2798_v22  ;;  %v906_v45 = vsub.f32 %v577_v36, %v2240_v17 }
 0x24f   :  { %v1043_v58 = vmax.f32 %v915_v59, 0.0  ;;  %v514_v28 = vpop.permute.xlu0 %513  ;;  %v683_v1 = vpop.permute.xlu1 %682  ;;  %v1952_v63 = vsel %vm1351_vm15, 1.0, %v2125_v0  ;;  %v1954_v48 = vsel %vm1353_vm4, 1.0, %v2125_v0 }
 0x250   :  { %v891_v34 = vsub.f32 %v514_v28, %v2236_v14  ;;  %v931_v47 = vsub.f32 %v683_v1, %v2244_v19  ;;  %v1756_v6 = vadd.f32 %v1949_v20, %v1755_v30 }
 0x251   :  { %v1200_v32 = vadd.f32 %v1199_v35, %v1043_v58  ;;  %vm1363_vm0 = vcmp.gt.f32.partialorder %v1043_v58, 0.0 }
 0x252   :  { %v1964_v22 = vsel %vm1363_vm0, 1.0, %v2125_v0  ;;  %v1019_v25 = vmax.f32 %v891_v34, 0.0  ;;  %v1059_v4 = vmax.f32 %v931_v47, 0.0  ;;  %vm1252_vm0 = vcmask 1044484  }
 0x253   :  { %v1776_v41 = vadd.f32 %v1964_v22, %v1775_v24  ;;  %v581_v38 = vpop.permute.xlu0 %580  ;;  %v1201_v9 = vadd.f32 %v1200_v32, %v2811_v2  ;;  %v557_v40 = vpop.permute.xlu1 %556  ;;  %v1034_v2 = vmax.f32 %v906_v45, 0.0  ;;  %v1953_v24 = vsel %vm1352_vm1, 1.0, %v2125_v0 }
 0x254   :  { %v1166_v13 = vadd.f32 %v1165_v50, %v1019_v25  ;;  %vm1339_vm2 = vcmp.gt.f32.partialorder %v1019_v25, 0.0  ;;  %v907_v12 = vsub.f32 %v581_v38, %v2240_v17  ;;  %v1221_v37 = vadd.f32 %v1220_v3, %v1059_v4 }
 0x255   :  { %v1940_v61 = vsel %vm1339_vm2, 1.0, %v2125_v0  ;;  %vm1379_vm3 = vcmp.gt.f32.partialorder %v1059_v4, 0.0  ;;  %v901_v26 = vsub.f32 %v557_v40, %v2240_v17  ;;  %v1777_v35 = vadd.f32 %v1965_v31, %v1776_v41 }
 0x256   :  { %v1742_v43 = vadd.f32 %v1940_v61, %v1741_v54  ;;  %v1980_v11 = vsel %vm1379_vm3, 1.0, %v2125_v0  ;;  %v1222_v55 = vadd.f32 %v1221_v37, %v2815_v57  ;;  %v1035_v10 = vmax.f32 %v907_v12, 0.0 }
 0x257   :  { %v1797_v16 = vadd.f32 %v1980_v11, %v1796_v39  ;;  %v1029_v20 = vmax.f32 %v901_v26, 0.0  ;;  %v518_v7 = vpop.permute.xlu0 %517  ;;  %v624_v44 = vpop.permute.xlu1 %623  ;;  %vm1354_vm6 = vcmp.gt.f32.partialorder %v1034_v2, 0.0  ;;  %vm1254_vm3 = vcmask 1045509  }
 0x258   :  { %v892_v8 = vsub.f32 %v518_v7, %v2236_v14  ;;  %v917_v57 = vsub.f32 %v624_v44, %v2242_v18  ;;  %vm1355_vm7 = vcmp.gt.f32.partialorder %v1035_v10, 0.0 }
 0x259   :  { %v1181_v60 = vadd.f32 %v1180_v56, %v1029_v20  ;;  %vm1349_vm5 = vcmp.gt.f32.partialorder %v1029_v20, 0.0  ;;  %v1798_v15 = vadd.f32 %v1981_v5, %v1797_v16  ;;  %v1955_v56 = vsel %vm1354_vm6, 1.0, %v2125_v0 }
 0x25a   :  { %v1950_v36 = vsel %vm1349_vm5, 1.0, %v2125_v0  ;;  %v1020_v3 = vmax.f32 %v892_v8, 0.0  ;;  %v1045_v51 = vmax.f32 %v917_v57, 0.0 }
 0x25b   :  { %v1182_v50 = vadd.f32 %v1181_v60, %v2832_v42  ;;  %v1757_v29 = vadd.f32 %v1950_v36, %v1756_v6  ;;  %v585_v27 = vpop.permute.xlu0 %584  ;;  %v691_v54 = vpop.permute.xlu1 %690  ;;  %v1956_v6 = vsel %vm1355_vm7, 1.0, %v2125_v0 }
 0x25c   :  { %v1167_v59 = vadd.f32 %v1166_v13, %v1020_v3  ;;  %vm1340_vm8 = vcmp.gt.f32.partialorder %v1020_v3, 0.0  ;;  %v908_v33 = vsub.f32 %v585_v27, %v2240_v17  ;;  %v1202_v30 = vadd.f32 %v1201_v9, %v1045_v51 }
 0x25d   :  { %v1183_v62 = vadd.f32 %v1182_v50, %v2834_v49  ;;  %v1758_v39 = vadd.f32 %v1951_v53, %v1757_v29  ;;  %v1941_v31 = vsel %vm1340_vm8, 1.0, %v2125_v0  ;;  %vm1365_vm9 = vcmp.gt.f32.partialorder %v1045_v51, 0.0 }
 0x25e   :  { %v1743_v58 = vadd.f32 %v1941_v31, %v1742_v43  ;;  %v1036_v28 = vmax.f32 %v908_v33, 0.0  ;;  %v933_v42 = vsub.f32 %v691_v54, %v2244_v19  ;;  %v1966_v1 = vsel %vm1365_vm9, 1.0, %v2125_v0 }
 0x25f   :  { %v1184_v5 = vadd.f32 %v1183_v62, %v2851_v46  ;;  %v1759_v34 = vadd.f32 %v1952_v63, %v1758_v39  ;;  %v522_v32 = vpop.permute.xlu0 %521  ;;  %v1778_v47 = vadd.f32 %v1966_v1, %v1777_v35  ;;  %v628_v25 = vpop.permute.xlu1 %627 }
 0x260   :  { %vm1356_vm10 = vcmp.gt.f32.partialorder %v1036_v28, 0.0  ;;  %v1061_v49 = vmax.f32 %v933_v42, 0.0  ;;  %v893_v22 = vsub.f32 %v522_v32, %v2236_v14  ;;  %v918_v4 = vsub.f32 %v628_v25, %v2242_v18 }
 0x261   :  { %v1760_v45 = vadd.f32 %v1953_v24, %v1759_v34  ;;  %v1185_v41 = vadd.f32 %v1184_v5, %v2856_v23  ;;  %v1957_v46 = vsel %vm1356_vm10, 1.0, %v2125_v0 }
 0x262   :  { %v1223_v38 = vadd.f32 %v1222_v55, %v1061_v49  ;;  %vm1381_vm11 = vcmp.gt.f32.partialorder %v1061_v49, 0.0  ;;  %v1021_v9 = vmax.f32 %v893_v22, 0.0  ;;  %v1046_v61 = vmax.f32 %v918_v4, 0.0 }
 0x263   :  { %v1186_v13 = vadd.f32 %v1185_v41, %v1034_v2  ;;  %v1761_v12 = vadd.f32 %v1954_v48, %v1760_v45  ;;  %v1982_v40 = vsel %vm1381_vm11, 1.0, %v2125_v0  ;;  %v589_v14 = vpop.permute.xlu0 %588  ;;  %v695_v11 = vpop.permute.xlu1 %694 }
 0x264   :  { %v1799_v37 = vadd.f32 %v1982_v40, %v1798_v15  ;;  %v1168_v26 = vadd.f32 %v1167_v59, %v1021_v9  ;;  %vm1341_vm12 = vcmp.gt.f32.partialorder %v1021_v9, 0.0  ;;  %v909_v43 = vsub.f32 %v589_v14, %v2240_v17 }
 0x265   :  { %v1187_v23 = vadd.f32 %v1186_v13, %v1035_v10  ;;  %v1762_v35 = vadd.f32 %v1955_v56, %v1761_v12  ;;  %v1942_v16 = vsel %vm1341_vm12, 1.0, %v2125_v0  ;;  %v1203_v20 = vadd.f32 %v1202_v30, %v1046_v61 }
 0x266   :  { %v1169_v7 = vrot.slane %v1168_v26, 4  ;;  %v1744_v55 = vadd.f32 %v1942_v16, %v1743_v58  ;;  %vm1366_vm13 = vcmp.gt.f32.partialorder %v1046_v61, 0.0  ;;  %v1037_v2 = vmax.f32 %v909_v43, 0.0 }
 0x267   :  { %v1188_v53 = vadd.f32 %v1187_v23, %v1036_v28  ;;  %v1763_v63 = vadd.f32 %v1956_v6, %v1762_v35  ;;  %v1967_v8 = vsel %vm1366_vm13, 1.0, %v2125_v0  ;;  %v934_v44 = vsub.f32 %v695_v11, %v2244_v19  ;;  %v632_v17 = vpop.permute.xlu1 %631 }
 0x268   :  { %v1170_v24 = vadd.f32 %v1169_v7, %v1168_v26  ;;  %v1745_v60 = vrot.slane %v1744_v55, 4  ;;  %v1779_v57 = vadd.f32 %v1967_v8, %v1778_v47  ;;  %vm1357_vm14 = vcmp.gt.f32.partialorder %v1037_v2, 0.0 }
 0x269   :  { %v1764_v10 = vadd.f32 %v1957_v46, %v1763_v63  ;;  %v1189_v48 = vadd.f32 %v1188_v53, %v1037_v2  ;;  %v1958_v36 = vsel %vm1357_vm14, 1.0, %v2125_v0  ;;  %v1062_v3 = vmax.f32 %v934_v44, 0.0 }
 0x26a   :  { %v1171_v15 = vrot.slane %v1170_v24, 2  ;;  %v1746_v50 = vadd.f32 %v1745_v60, %v1744_v55  ;;  %v919_v29 = vsub.f32 %v632_v17, %v2242_v18 }
 0x26b   :  { %v1190_v51 = vrot.slane %v1189_v48, 4  ;;  %v1765_v27 = vadd.f32 %v1958_v36, %v1764_v10  ;;  %v1224_v59 = vadd.f32 %v1223_v38, %v1062_v3  ;;  %vm1382_vm15 = vcmp.gt.f32.partialorder %v1062_v3, 0.0  ;;  %v699_v39 = vpop.permute.xlu1 %698 }
 0x26c   :  { %v1172_v33 = vadd.f32 %v1171_v15, %v1170_v24  ;;  %v1747_v54 = vrot.slane %v1746_v50, 2  ;;  %v1983_v62 = vsel %vm1382_vm15, 1.0, %v2125_v0  ;;  %v1047_v28 = vmax.f32 %v919_v29, 0.0 }
 0x26d   :  { %v1191_v31 = vadd.f32 %v1190_v51, %v1189_v48  ;;  %v1766_v30 = vrot.slane %v1765_v27, 4  ;;  %v1800_v58 = vadd.f32 %v1983_v62, %v1799_v37  ;;  %v935_v5 = vsub.f32 %v699_v39, %v2244_v19 }
 0x26e   :  { %v1173_v42 = vrot.slane %v1172_v33, 1  ;;  %v1748_v56 = vadd.f32 %v1747_v54, %v1746_v50  ;;  %v1204_v32 = vadd.f32 %v1203_v20, %v1047_v28  ;;  %vm1367_vm1 = vcmp.gt.f32.partialorder %v1047_v28, 0.0 }
 0x26f   :  { %v1192_v34 = vrot.slane %v1191_v31, 2  ;;  %v1767_v1 = vadd.f32 %v1766_v30, %v1765_v27  ;;  %v1063_v22 = vmax.f32 %v935_v5, 0.0  ;;  %v636_v25 = vpop.permute.xlu1 %635  ;;  %v1968_v41 = vsel %vm1367_vm1, 1.0, %v2125_v0 }
 0x270   :  { %v1174_v47 = vadd.f32 %v1173_v42, %v1172_v33  ;;  %v1749_v49 = vrot.slane %v1748_v56, 1  ;;  %v920_v4 = vsub.f32 %v636_v25, %v2242_v18  ;;  %v1780_v38 = vadd.f32 %v1968_v41, %v1779_v57 }
 0x271   :  { %v1193_v6 = vadd.f32 %v1192_v34, %v1191_v31  ;;  %v1768_v45 = vrot.slane %v1767_v1, 2  ;;  %v1225_v9 = vadd.f32 %v1224_v59, %v1063_v22  ;;  %vm1383_vm2 = vcmp.gt.f32.partialorder %v1063_v22, 0.0 }
 0x272   :  { %v1750_v46 = vadd.f32 %v1749_v49, %v1748_v56  ;;  %v1984_v40 = vsel %vm1383_vm2, 1.0, %v2125_v0  ;;  %v1048_v61 = vmax.f32 %v920_v4, 0.0  ;;  %v1253_v26 = vsel %vm1252_vm0, %v1174_v47, %v2749_v52  ;;  %v656_v56 = vpop.permute.xlu0 %655 }
 0x273   :  { %v1194_v13 = vrot.slane %v1193_v6, 1  ;;  %v1769_v12 = vadd.f32 %v1768_v45, %v1767_v1  ;;  %v1801_v14 = vadd.f32 %v1984_v40, %v1800_v58  ;;  %v703_v37 = vpop.permute.xlu1 %702  ;;  %v925_v47 = vsub.f32 %v656_v56, %v2242_v18 }
 0x274   :  { %v1825_v43 = vsel %vm1252_vm0, %v1750_v46, %v2753_v21  ;;  %v1205_v35 = vadd.f32 %v1204_v32, %v1048_v61  ;;  %vm1368_vm4 = vcmp.gt.f32.partialorder %v1048_v61, 0.0  ;;  %v936_v20 = vsub.f32 %v703_v37, %v2244_v19 }
 0x275   :  { %v1195_v11 = vadd.f32 %v1194_v13, %v1193_v6  ;;  %v1770_v23 = vrot.slane %v1769_v12, 1  ;;  %v1969_v16 = vsel %vm1368_vm4, 1.0, %v2125_v0  ;;  %v1053_v4 = vmax.f32 %v925_v47, 0.0 }
 0x276   :  { %v1781_v55 = vadd.f32 %v1969_v16, %v1780_v38  ;;  %v1064_v53 = vmax.f32 %v936_v20, 0.0  ;;  %vm1256_vm0 = vcmask 1046534   ;;  %vm1258_vm1 = vcmask 1047559  }
 0x277   :  { %v1771_v7 = vadd.f32 %v1770_v23, %v1769_v12  ;;  %v2916_v2 = vsel %vm1254_vm3, %v1195_v11, %v1253_v26  ;;  %v640_v63 = vpop.permute.xlu1 %639  ;;  %vm1373_vm12 = vcmp.gt.f32.partialorder %v1053_v4, 0.0 }
 0x278   :  { %v921_v52 = vsub.f32 %v640_v63, %v2242_v18  ;;  %v1226_v44 = vadd.f32 %v1225_v9, %v1064_v53  ;;  %vm1384_vm5 = vcmp.gt.f32.partialorder %v1064_v53, 0.0  ;;  %v1974_v23 = vsel %vm1373_vm12, 1.0, %v2125_v0 }
 0x279   :  { %v2919_v8 = vsel %vm1254_vm3, %v1771_v7, %v1825_v43  ;;  %v1985_v21 = vsel %vm1384_vm5, 1.0, %v2125_v0 }
 0x27a   :  { %v1049_v24 = vmax.f32 %v921_v52, 0.0  ;;  %v1802_v60 = vadd.f32 %v1985_v21, %v1801_v14 }
 0x27b   :  { %v707_v57 = vpop.permute.xlu1 %706 }
 0x27c   :  { %v1206_v17 = vadd.f32 %v1205_v35, %v1049_v24  ;;  %vm1369_vm6 = vcmp.gt.f32.partialorder %v1049_v24, 0.0  ;;  %v937_v10 = vsub.f32 %v707_v57, %v2244_v19 }
 0x27d   :  { %v1970_v48 = vsel %vm1369_vm6, 1.0, %v2125_v0 }
 0x27e   :  { %v1782_v36 = vadd.f32 %v1970_v48, %v1781_v55  ;;  %v1065_v3 = vmax.f32 %v937_v10, 0.0 }
 0x27f   :  { %v644_v15 = vpop.permute.xlu1 %643 }
 0x280   :  { %v1227_v50 = vadd.f32 %v1226_v44, %v1065_v3  ;;  %vm1385_vm7 = vcmp.gt.f32.partialorder %v1065_v3, 0.0  ;;  %v922_v29 = vsub.f32 %v644_v15, %v2242_v18 }
 0x281   :  { %v1986_v51 = vsel %vm1385_vm7, 1.0, %v2125_v0 }
 0x282   :  { %v1803_v27 = vadd.f32 %v1986_v51, %v1802_v60  ;;  %v1050_v59 = vmax.f32 %v922_v29, 0.0 }
 0x283   :  { %v711_v33 = vpop.permute.xlu1 %710 }
 0x284   :  { %v1207_v54 = vadd.f32 %v1206_v17, %v1050_v59  ;;  %vm1370_vm8 = vcmp.gt.f32.partialorder %v1050_v59, 0.0  ;;  %v938_v62 = vsub.f32 %v711_v33, %v2244_v19 }
 0x285   :  { %v1971_v39 = vsel %vm1370_vm8, 1.0, %v2125_v0 }
 0x286   :  { %v1783_v31 = vadd.f32 %v1971_v39, %v1782_v36  ;;  %v1066_v30 = vmax.f32 %v938_v62, 0.0 }
 0x287   :  { %v648_v58 = vpop.permute.xlu1 %647 }
 0x288   :  { %v1228_v28 = vadd.f32 %v1227_v50, %v1066_v30  ;;  %vm1386_vm9 = vcmp.gt.f32.partialorder %v1066_v30, 0.0  ;;  %v923_v42 = vsub.f32 %v648_v58, %v2242_v18 }
 0x289   :  { %v1987_v5 = vsel %vm1386_vm9, 1.0, %v2125_v0 }
 0x28a   :  { %v1804_v34 = vadd.f32 %v1987_v5, %v1803_v27  ;;  %v1051_v1 = vmax.f32 %v923_v42, 0.0 }
 0x28b   :  { %v715_v32 = vpop.permute.xlu1 %714 }
 0x28c   :  { %v1208_v49 = vadd.f32 %v1207_v54, %v1051_v1  ;;  %vm1371_vm10 = vcmp.gt.f32.partialorder %v1051_v1, 0.0  ;;  %v939_v22 = vsub.f32 %v715_v32, %v2244_v19 }
 0x28d   :  { %v1972_v25 = vsel %vm1371_vm10, 1.0, %v2125_v0 }
 0x28e   :  { %v1784_v6 = vadd.f32 %v1972_v25, %v1783_v31  ;;  %v1067_v45 = vmax.f32 %v939_v22, 0.0 }
 0x28f   :  { %v652_v41 = vpop.permute.xlu1 %651 }
 0x290   :  { %v1229_v46 = vadd.f32 %v1228_v28, %v1067_v45  ;;  %vm1387_vm11 = vcmp.gt.f32.partialorder %v1067_v45, 0.0  ;;  %v924_v38 = vsub.f32 %v652_v41, %v2242_v18 }
 0x291   :  { %v1988_v9 = vsel %vm1387_vm11, 1.0, %v2125_v0 }
 0x292   :  { %v1805_v13 = vadd.f32 %v1988_v9, %v1804_v34  ;;  %v1052_v12 = vmax.f32 %v924_v38, 0.0 }
 0x293   :  { %v719_v40 = vpop.permute.xlu1 %718 }
 0x294   :  { %v1209_v61 = vadd.f32 %v1208_v49, %v1052_v12  ;;  %vm1372_vm13 = vcmp.gt.f32.partialorder %v1052_v12, 0.0  ;;  %v940_v14 = vsub.f32 %v719_v40, %v2244_v19 }
 0x295   :  { %v1973_v37 = vsel %vm1372_vm13, 1.0, %v2125_v0 }
 0x296   :  { %v1210_v26 = vadd.f32 %v1209_v61, %v1053_v4  ;;  %v1785_v43 = vadd.f32 %v1973_v37, %v1784_v6  ;;  %v1068_v11 = vmax.f32 %v940_v14, 0.0 }
 0x297   :  { %v723_v35 = vpop.permute.xlu1 %722 }
 0x298   :  { %v1211_v16 = vrot.slane %v1210_v26, 4  ;;  %v1786_v18 = vadd.f32 %v1974_v23, %v1785_v43  ;;  %v1230_v20 = vadd.f32 %v1229_v46, %v1068_v11  ;;  %vm1388_vm14 = vcmp.gt.f32.partialorder %v1068_v11, 0.0 }
 0x299   :  { %v1989_v7 = vsel %vm1388_vm14, 1.0, %v2125_v0  ;;  %v941_v55 = vsub.f32 %v723_v35, %v2244_v19 }
 0x29a   :  { %v1212_v53 = vadd.f32 %v1211_v16, %v1210_v26  ;;  %v1787_v63 = vrot.slane %v1786_v18, 4  ;;  %v1806_v52 = vadd.f32 %v1989_v7, %v1805_v13 }
 0x29b   :  { %v1069_v44 = vmax.f32 %v941_v55, 0.0 }
 0x29c   :  { %v1213_v21 = vrot.slane %v1212_v53, 2  ;;  %v1788_v24 = vadd.f32 %v1787_v63, %v1786_v18 }
 0x29d   :  { %v1231_v60 = vadd.f32 %v1230_v20, %v1069_v44  ;;  %vm1389_vm15 = vcmp.gt.f32.partialorder %v1069_v44, 0.0 }
 0x29e   :  { %v1214_v57 = vadd.f32 %v1213_v21, %v1212_v53  ;;  %v1789_v17 = vrot.slane %v1788_v24, 2  ;;  %v1990_v10 = vsel %vm1389_vm15, 1.0, %v2125_v0 }
 0x29f   :  { %v1232_v48 = vrot.slane %v1231_v60, 4  ;;  %v1807_v36 = vadd.f32 %v1990_v10, %v1806_v52 }
 0x2a0   :  { %v1215_v3 = vrot.slane %v1214_v57, 1  ;;  %v1790_v15 = vadd.f32 %v1789_v17, %v1788_v24 }
 0x2a1   :  { %v1233_v50 = vadd.f32 %v1232_v48, %v1231_v60  ;;  %v1808_v29 = vrot.slane %v1807_v36, 4 }
 0x2a2   :  { %v1216_v19 = vadd.f32 %v1215_v3, %v1214_v57  ;;  %v1791_v51 = vrot.slane %v1790_v15, 1 }
 0x2a3   :  { %v1234_v27 = vrot.slane %v1233_v50, 2  ;;  %v1809_v59 = vadd.f32 %v1808_v29, %v1807_v36 }
 0x2a4   :  { %v1257_v33 = vsel %vm1256_vm0, %v1216_v19, %v2916_v2  ;;  %v1792_v54 = vadd.f32 %v1791_v51, %v1790_v15 }
 0x2a5   :  { %v1235_v62 = vadd.f32 %v1234_v27, %v1233_v50  ;;  %v1810_v39 = vrot.slane %v1809_v59, 2 }
 0x2a6   :  { %v1827_v31 = vsel %vm1256_vm0, %v1792_v54, %v2919_v8 }
 0x2a7   :  { %v1236_v30 = vrot.slane %v1235_v62, 1  ;;  %v1811_v0 = vadd.f32 %v1810_v39, %v1809_v59 }
 0x2a9   :  { %v1237_v58 = vadd.f32 %v1236_v30, %v1235_v62  ;;  %v1812_v28 = vrot.slane %v1811_v0, 1 }
 0x2ab   :  { %v1259_v42 = vsel %vm1258_vm1, %v1237_v58, %v1257_v33  ;;  %v1813_v56 = vadd.f32 %v1812_v28, %v1811_v0 }
 0x2ac   :  { %1261 = vst [vmem:[#allocation7] sm:$0xff] %v1259_v42 }
 0x2ad   :  { %2087 = shalt.err (!%p2084_p9)
}
 0x2ae   :  { %1840 = dma.vmem_to_hbm [thread:$0]  %s1838_s4, 128, %s2956_s5, [#allocation6]   ;;  %v1828_v2 = vsel %vm1258_vm1, %v1813_v56, %v1827_v31 }
 0x2af   :  { %1830 = vst [vmem:[#allocation8] sm:$0xff] %v1828_v2  ;;  %s2096_s14 = scalar_lea.vmem %s1848_s10, 128  ;;  %p2101_p11 = scmp.lt.s32.totalorder %s1848_s10, %s1848_s10 }
 0x2b0   :  { %p2097_p10 = scmp.ne.s32.totalorder %s1848_s10, %s2096_s14  ;;  %p2102_p12 = scmp.lt.s32.totalorder %s2096_s14, %s2096_s14 }
 0x2b2   :  { %p2103_p13 = por %p2102_p12, %p2101_p11 }
 0x2b4   :  { %p2104_p0 = pnand %p2103_p13, %p2097_p10 }
 0x2b6   :  { %2107 = shalt.err (!%p2104_p0)
}
 0x2b7   :  { %1850 = dma.vmem_to_hbm [thread:$0]  %s1848_s10, 128, %s2957_s6, [#allocation9]  }
 0x2b8   :  { %2118 = dma.done.wait [#allocation6], 128  }
 0x2b9   :  { %2119 = vsyncadd [#allocation6], 4294967168 }
 0x2ba   :  { %2120 = dma.done.wait [#allocation9], 128  }
 0x2bb   :  { %2121 = vsyncadd [#allocation9], 4294967168 }
 0x2bc   :  { %1857 = vsyncpa [#allocation5], 1 }
 0x2bd   :  { %1858 = vsyncpa [#allocation6], 1 }
 0x2be   :  { %1859 = vsyncpa [#allocation9], 1 }

</bundles_post_ra>
